<compile_context>
chip_gen: v7x
topology: tpu7x:2x2x1
jax: 0.10.0
libtpu: 0.0.40
codegen_flags: <defaults>
</compile_context>

<pallas_src>
import math

import jax
import jax.numpy as jnp
from jax.experimental import pallas as pl
from jax.experimental.pallas import tpu as pltpu

# ---- small, module-consistent shapes ----
B, S, D, H, DFF = 2, 8, 32, 4, 64   # batch, seq, d_model, heads, d_ff
DK = D // H
EPS = 1e-5                          # PyTorch nn.LayerNorm default eps

PARAM_ORDER = ["wq", "wk", "wv", "wo", "bq", "bk", "bv", "bo",
               "ga", "ba", "wf1", "bf1", "wf2", "bf2", "gf", "bf"]


# --------------------------------------------------------------------------
# Pallas kernel: one invocation, both encoder blocks fused, batch flattened.
# --------------------------------------------------------------------------
def _layernorm(x, gamma, beta):
    mu = jnp.mean(x, axis=-1, keepdims=True)
    var = jnp.mean(jnp.square(x - mu), axis=-1, keepdims=True)
    return (x - mu) * jax.lax.rsqrt(var + EPS) * gamma + beta


def encoder_kernel(x_ref, wqkvb_ref, wf1_ref, wof2_ref, o_ref):
    x = x_ref[...].astype(jnp.float32)                 # (B*S, D) = (16, 32)
    scale = 1.0 / math.sqrt(DK)

    for blk in range(2):                               # two encoder blocks (static)
        # ---- unpack the per-block parameter slabs (all static, aligned slices) ----
        w_qkv = wqkvb_ref[blk, 0:D, :]                 # (D, 3D)  = (32, 96)
        b_qkv = wqkvb_ref[blk, D + 0:D + 1, :]         # (1, 96)
        b_o   = wqkvb_ref[blk, D + 1:D + 2, 0:D]       # (1, 32)
        b_f1  = wqkvb_ref[blk, D + 2:D + 3, 0:DFF]     # (1, 64)
        b_f2  = wqkvb_ref[blk, D + 3:D + 4, 0:D]
        ga    = wqkvb_ref[blk, D + 4:D + 5, 0:D]
        ba    = wqkvb_ref[blk, D + 5:D + 6, 0:D]
        gf    = wqkvb_ref[blk, D + 6:D + 7, 0:D]
        bf    = wqkvb_ref[blk, D + 7:D + 8, 0:D]
        w_f1  = wf1_ref[blk]                           # (D, DFF)  = (32, 64)
        w_o   = wof2_ref[blk, 0:D, :]                  # (D, D)    = (32, 32)
        w_f2  = wof2_ref[blk, D:D + DFF, :]            # (DFF, D)  = (64, 32)

        # ---------------- fused QKV projection: one matmul over all 16 rows ----------------
        qkv = jnp.dot(x, w_qkv, preferred_element_type=jnp.float32) + b_qkv   # (16, 96)

        # ---------------- batched multi-head self-attention ----------------
        # Gather all (batch, head) slices into (B*H, S, DK) so scores/softmax/PV
        # run as a single batched op instead of 8 serialized tiny chains.
        q_sl, k_sl, v_sl = [], [], []
        for bb in range(B):
            r0 = bb * S
            for hh in range(H):
                c = hh * DK
                q_sl.append(qkv[r0:r0 + S, c:c + DK])
                k_sl.append(qkv[r0:r0 + S, D + c:D + c + DK])
                v_sl.append(qkv[r0:r0 + S, 2 * D + c:2 * D + c + DK])
        q3 = jnp.stack(q_sl, axis=0)                   # (B*H, S, DK) = (8, 8, 8)
        k3 = jnp.stack(k_sl, axis=0)
        v3 = jnp.stack(v_sl, axis=0)

        s = jnp.einsum("bqd,bkd->bqk", q3, k3,
                       preferred_element_type=jnp.float32) * scale
        s = s - jnp.max(s, axis=-1, keepdims=True)
        p = jnp.exp(s)
        l = jnp.sum(p, axis=-1, keepdims=True)
        o3 = jnp.einsum("bqk,bkd->bqd", p, v3,
                        preferred_element_type=jnp.float32)
        # deferred softmax normalization on the PV result (exact reciprocal to
        # keep the 1e-4 reference tolerance)
        o3 = o3 * pl.reciprocal(l, approx=False)       # (B*H, S, DK)

        # Output projection without the head lane-concat:
        #   attn @ Wo == sum_h head_h @ Wo[h*DK:(h+1)*DK, :]
        proj = []
        for bb in range(B):
            acc = jnp.zeros((S, D), jnp.float32)
            for hh in range(H):
                acc = acc + jnp.dot(o3[bb * H + hh],
                                    w_o[hh * DK:(hh + 1) * DK, :],
                                    preferred_element_type=jnp.float32)
            proj.append(acc)
        attn = jnp.concatenate(proj, axis=0) + b_o     # (16, 32), sublane concat only

        x = _layernorm(x + attn, ga, ba)

        # ---------------- position-wise feed-forward ----------------
        h1 = jnp.dot(x, w_f1, preferred_element_type=jnp.float32) + b_f1
        h1 = jnp.maximum(h1, 0.0)                      # ReLU
        ff = jnp.dot(h1, w_f2, preferred_element_type=jnp.float32) + b_f2

        x = _layernorm(x + ff, gf, bf)

    o_ref[...] = x.astype(o_ref.dtype)


def encoder_forward(x, w_qkvb, w_f1, w_of2):
    """x: (B, S, D) float32, already pos-embedded. Params are the packed slabs."""
    Bx, Sx, Dx = x.shape
    x2 = x.reshape(Bx * Sx, Dx)                        # free, contiguous reshape

    vmem_spec = lambda: pl.BlockSpec(memory_space=pltpu.MemorySpace.VMEM)
    out2 = pl.pallas_call(
        encoder_kernel,
        out_shape=jax.ShapeDtypeStruct((Bx * Sx, Dx), x.dtype),
        in_specs=[vmem_spec(), vmem_spec(), vmem_spec(), vmem_spec()],
        out_specs=vmem_spec(),
    )(x2, w_qkvb, w_f1, w_of2)
    return out2.reshape(Bx, Sx, Dx)


# --------------------------------------------------------------------------
# Deterministic parameter init (PyTorch nn.Linear-style uniform bounds).
# --------------------------------------------------------------------------
def init_params(key):
    keys = iter(jax.random.split(key, 32))

    def lin(in_dim, out_dim):
        bound = 1.0 / math.sqrt(in_dim)
        w = jax.random.uniform(next(keys), (in_dim, out_dim), jnp.float32, -bound, bound)
        b = jax.random.uniform(next(keys), (1, out_dim), jnp.float32, -bound, bound)
        return w, b

    blocks = []
    for _ in range(2):
        wq, bq = lin(D, D)
        wk, bk = lin(D, D)
        wv, bv = lin(D, D)
        wo, bo = lin(D, D)
        wf1, bf1 = lin(D, DFF)
        wf2, bf2 = lin(DFF, D)
        blocks.append(dict(
            wq=wq, wk=wk, wv=wv, wo=wo, bq=bq, bk=bk, bv=bv, bo=bo,
            ga=jnp.ones((1, D), jnp.float32), ba=jnp.zeros((1, D), jnp.float32),
            wf1=wf1, bf1=bf1, wf2=wf2, bf2=bf2,
            gf=jnp.ones((1, D), jnp.float32), bf=jnp.zeros((1, D), jnp.float32)))

    return {k: jnp.stack([blocks[0][k], blocks[1][k]], axis=0) for k in PARAM_ORDER}


def pack_params(p):
    """Pack the 16 parameter tensors into 3 slabs (one DMA each)."""
    w_qkv = jnp.concatenate([p["wq"], p["wk"], p["wv"]], axis=-1)       # (2, 32, 96)

    def pad96(a):                                                        # (2, 1, W) -> (2, 1, 96)
        return jnp.pad(a, ((0, 0), (0, 0), (0, 3 * D - a.shape[-1])))

    bias_rows = jnp.concatenate([
        jnp.concatenate([p["bq"], p["bk"], p["bv"]], axis=-1),           # row 0: b_qkv
        pad96(p["bo"]),                                                  # row 1
        pad96(p["bf1"]),                                                 # row 2
        pad96(p["bf2"]),                                                 # row 3
        pad96(p["ga"]),                                                  # row 4
        pad96(p["ba"]),                                                  # row 5
        pad96(p["gf"]),                                                  # row 6
        pad96(p["bf"]),                                                  # row 7
    ], axis=1)                                                           # (2, 8, 96)

    w_qkvb = jnp.concatenate([w_qkv, bias_rows], axis=1)                 # (2, 40, 96)
    w_of2 = jnp.concatenate([p["wo"], p["wf2"]], axis=1)                 # (2, 96, 32)
    return w_qkvb, p["wf1"], w_of2


def sinusoidal_pe(seq, dim):
    pos = jnp.arange(seq, dtype=jnp.float32)[:, None]
    i = jnp.arange(0, dim, 2, dtype=jnp.float32)
    div = jnp.exp(-math.log(10000.0) * i / dim)
    pe = jnp.zeros((seq, dim), jnp.float32)
    pe = pe.at[:, 0::2].set(jnp.sin(pos * div))
    pe = pe.at[:, 1::2].set(jnp.cos(pos * div))
    return pe


# --------------------------------------------------------------------------
# Pure-JAX reference (mirrors the PyTorch forward exactly, eval mode).
# --------------------------------------------------------------------------
def reference_forward(x, p):
    def ln(t, g, b):
        mu = t.mean(-1, keepdims=True)
        var = ((t - mu) ** 2).mean(-1, keepdims=True)
        return (t - mu) / jnp.sqrt(var + EPS) * g + b

    def mha(t, blk):
        q = t @ p["wq"][blk] + p["bq"][blk]
        k = t @ p["wk"][blk] + p["bk"][blk]
        v = t @ p["wv"][blk] + p["bv"][blk]
        split = lambda a: a.reshape(B, S, H, DK).transpose(0, 2, 1, 3)
        q, k, v = split(q), split(k), split(v)
        sc = jnp.einsum("bhqd,bhkd->bhqk", q, k) / math.sqrt(DK)
        pa = jax.nn.softmax(sc, axis=-1)
        o = jnp.einsum("bhqk,bhkd->bhqd", pa, v)
        o = o.transpose(0, 2, 1, 3).reshape(B, S, D)
        return o @ p["wo"][blk] + p["bo"][blk]

    for blk in range(2):
        x = ln(x + mha(x, blk), p["ga"][blk], p["ba"][blk])
        ff = jnp.maximum(x @ p["wf1"][blk] + p["bf1"][blk], 0.0) @ p["wf2"][blk] + p["bf2"][blk]
        x = ln(x + ff, p["gf"][blk], p["bf"][blk])
    return x


if __name__ == "__main__":
    key = jax.random.PRNGKey(0)
    kx, kp = jax.random.split(key)

    x = jax.random.normal(kx, (B, S, D), jnp.float32)
    params = init_params(kp)

    # pos_embed (glue): additive sinusoidal positional encoding
    x_pe = x + sinusoidal_pe(S, D)[None, :, :]

    w_qkvb, w_f1, w_of2 = pack_params(params)

    out = encoder_forward(x_pe, w_qkvb, w_f1, w_of2)
    out = jax.block_until_ready(out)

    ref = reference_forward(x_pe, params)
    assert out.shape == (B, S, D)
    assert jnp.allclose(out, ref, atol=1e-4, rtol=1e-4), (
        f"max abs diff {jnp.max(jnp.abs(out - ref))}")

    print("KERNEL_OK")
</pallas_src>

<mosaic_0001>
module attributes {stable_mosaic.version = 11 : i64} {
  func.func @encoder_kernel(%arg0: memref<16x32xf32, #tpu.memory_space<vmem>>, %arg1: memref<2x40x96xf32, #tpu.memory_space<vmem>>, %arg2: memref<2x32x64xf32, #tpu.memory_space<vmem>>, %arg3: memref<2x96x32xf32, #tpu.memory_space<vmem>>, %arg4: memref<16x32xf32, #tpu.memory_space<vmem>>) attributes {dimension_semantics = [], scalar_prefetch = 0 : i64, scratch_operands = 0 : i64, tpu.core_type = #tpu.core_type<tc>} {
    %c0 = arith.constant 0 : index
    %c0_0 = arith.constant 0 : index
    %0 = vector.load %arg0[%c0, %c0_0] : memref<16x32xf32, #tpu.memory_space<vmem>>, vector<16x32xf32>
    %c0_1 = arith.constant 0 : index
    %c0_2 = arith.constant 0 : index
    %c0_3 = arith.constant 0 : index
    %1 = vector.load %arg1[%c0_1, %c0_2, %c0_3] : memref<2x40x96xf32, #tpu.memory_space<vmem>>, vector<1x32x96xf32>
    %2 = vector.shape_cast %1 : vector<1x32x96xf32> to vector<32x96xf32>
    %c0_4 = arith.constant 0 : index
    %c32 = arith.constant 32 : index
    %c0_5 = arith.constant 0 : index
    %3 = vector.load %arg1[%c0_4, %c32, %c0_5] : memref<2x40x96xf32, #tpu.memory_space<vmem>>, vector<1x1x96xf32>
    %4 = vector.shape_cast %3 : vector<1x1x96xf32> to vector<1x96xf32>
    %c0_6 = arith.constant 0 : index
    %c33 = arith.constant 33 : index
    %c0_7 = arith.constant 0 : index
    %5 = vector.load %arg1[%c0_6, %c33, %c0_7] : memref<2x40x96xf32, #tpu.memory_space<vmem>>, vector<1x1x32xf32>
    %6 = vector.shape_cast %5 : vector<1x1x32xf32> to vector<1x32xf32>
    %c0_8 = arith.constant 0 : index
    %c34 = arith.constant 34 : index
    %c0_9 = arith.constant 0 : index
    %7 = vector.load %arg1[%c0_8, %c34, %c0_9] : memref<2x40x96xf32, #tpu.memory_space<vmem>>, vector<1x1x64xf32>
    %8 = vector.shape_cast %7 : vector<1x1x64xf32> to vector<1x64xf32>
    %c0_10 = arith.constant 0 : index
    %c35 = arith.constant 35 : index
    %c0_11 = arith.constant 0 : index
    %9 = vector.load %arg1[%c0_10, %c35, %c0_11] : memref<2x40x96xf32, #tpu.memory_space<vmem>>, vector<1x1x32xf32>
    %10 = vector.shape_cast %9 : vector<1x1x32xf32> to vector<1x32xf32>
    %c0_12 = arith.constant 0 : index
    %c36 = arith.constant 36 : index
    %c0_13 = arith.constant 0 : index
    %11 = vector.load %arg1[%c0_12, %c36, %c0_13] : memref<2x40x96xf32, #tpu.memory_space<vmem>>, vector<1x1x32xf32>
    %12 = vector.shape_cast %11 : vector<1x1x32xf32> to vector<1x32xf32>
    %c0_14 = arith.constant 0 : index
    %c37 = arith.constant 37 : index
    %c0_15 = arith.constant 0 : index
    %13 = vector.load %arg1[%c0_14, %c37, %c0_15] : memref<2x40x96xf32, #tpu.memory_space<vmem>>, vector<1x1x32xf32>
    %14 = vector.shape_cast %13 : vector<1x1x32xf32> to vector<1x32xf32>
    %c0_16 = arith.constant 0 : index
    %c38 = arith.constant 38 : index
    %c0_17 = arith.constant 0 : index
    %15 = vector.load %arg1[%c0_16, %c38, %c0_17] : memref<2x40x96xf32, #tpu.memory_space<vmem>>, vector<1x1x32xf32>
    %16 = vector.shape_cast %15 : vector<1x1x32xf32> to vector<1x32xf32>
    %c0_18 = arith.constant 0 : index
    %c39 = arith.constant 39 : index
    %c0_19 = arith.constant 0 : index
    %17 = vector.load %arg1[%c0_18, %c39, %c0_19] : memref<2x40x96xf32, #tpu.memory_space<vmem>>, vector<1x1x32xf32>
    %18 = vector.shape_cast %17 : vector<1x1x32xf32> to vector<1x32xf32>
    %c0_20 = arith.constant 0 : index
    %c0_21 = arith.constant 0 : index
    %c0_22 = arith.constant 0 : index
    %19 = vector.load %arg2[%c0_20, %c0_21, %c0_22] : memref<2x32x64xf32, #tpu.memory_space<vmem>>, vector<1x32x64xf32>
    %20 = vector.shape_cast %19 : vector<1x32x64xf32> to vector<32x64xf32>
    %c0_23 = arith.constant 0 : index
    %c0_24 = arith.constant 0 : index
    %c0_25 = arith.constant 0 : index
    %21 = vector.load %arg3[%c0_23, %c0_24, %c0_25] : memref<2x96x32xf32, #tpu.memory_space<vmem>>, vector<1x32x32xf32>
    %22 = vector.shape_cast %21 : vector<1x32x32xf32> to vector<32x32xf32>
    %c0_26 = arith.constant 0 : index
    %c32_27 = arith.constant 32 : index
    %c0_28 = arith.constant 0 : index
    %23 = vector.load %arg3[%c0_26, %c32_27, %c0_28] : memref<2x96x32xf32, #tpu.memory_space<vmem>>, vector<1x64x32xf32>
    %24 = vector.shape_cast %23 : vector<1x64x32xf32> to vector<64x32xf32>
    %cst = arith.constant dense<0.000000e+00> : vector<16x96xf32>
    %25 = tpu.matmul %0, %2, %cst {dimension_numbers = #tpu.dot_dimension_numbers<[1], [0], [0], [1], [0, 0, 1, 1], [], []>} : vector<16x32xf32>, vector<32x96xf32>, vector<16x96xf32> -> vector<16x96xf32>
    %26 = vector.broadcast %4 : vector<1x96xf32> to vector<16x96xf32>
    %27 = arith.addf %25, %26 : vector<16x96xf32>
    %28 = vector.extract_strided_slice %27 {offsets = [0, 0], sizes = [8, 8], strides = [1, 1]} : vector<16x96xf32> to vector<8x8xf32>
    %29 = vector.extract_strided_slice %27 {offsets = [0, 32], sizes = [8, 8], strides = [1, 1]} : vector<16x96xf32> to vector<8x8xf32>
    %30 = vector.extract_strided_slice %27 {offsets = [0, 64], sizes = [8, 8], strides = [1, 1]} : vector<16x96xf32> to vector<8x8xf32>
    %31 = vector.extract_strided_slice %27 {offsets = [0, 8], sizes = [8, 8], strides = [1, 1]} : vector<16x96xf32> to vector<8x8xf32>
    %32 = vector.extract_strided_slice %27 {offsets = [0, 40], sizes = [8, 8], strides = [1, 1]} : vector<16x96xf32> to vector<8x8xf32>
    %33 = vector.extract_strided_slice %27 {offsets = [0, 72], sizes = [8, 8], strides = [1, 1]} : vector<16x96xf32> to vector<8x8xf32>
    %34 = vector.extract_strided_slice %27 {offsets = [0, 16], sizes = [8, 8], strides = [1, 1]} : vector<16x96xf32> to vector<8x8xf32>
    %35 = vector.extract_strided_slice %27 {offsets = [0, 48], sizes = [8, 8], strides = [1, 1]} : vector<16x96xf32> to vector<8x8xf32>
    %36 = vector.extract_strided_slice %27 {offsets = [0, 80], sizes = [8, 8], strides = [1, 1]} : vector<16x96xf32> to vector<8x8xf32>
    %37 = vector.extract_strided_slice %27 {offsets = [0, 24], sizes = [8, 8], strides = [1, 1]} : vector<16x96xf32> to vector<8x8xf32>
    %38 = vector.extract_strided_slice %27 {offsets = [0, 56], sizes = [8, 8], strides = [1, 1]} : vector<16x96xf32> to vector<8x8xf32>
    %39 = vector.extract_strided_slice %27 {offsets = [0, 88], sizes = [8, 8], strides = [1, 1]} : vector<16x96xf32> to vector<8x8xf32>
    %40 = vector.extract_strided_slice %27 {offsets = [8, 0], sizes = [8, 8], strides = [1, 1]} : vector<16x96xf32> to vector<8x8xf32>
    %41 = vector.extract_strided_slice %27 {offsets = [8, 32], sizes = [8, 8], strides = [1, 1]} : vector<16x96xf32> to vector<8x8xf32>
    %42 = vector.extract_strided_slice %27 {offsets = [8, 64], sizes = [8, 8], strides = [1, 1]} : vector<16x96xf32> to vector<8x8xf32>
    %43 = vector.extract_strided_slice %27 {offsets = [8, 8], sizes = [8, 8], strides = [1, 1]} : vector<16x96xf32> to vector<8x8xf32>
    %44 = vector.extract_strided_slice %27 {offsets = [8, 40], sizes = [8, 8], strides = [1, 1]} : vector<16x96xf32> to vector<8x8xf32>
    %45 = vector.extract_strided_slice %27 {offsets = [8, 72], sizes = [8, 8], strides = [1, 1]} : vector<16x96xf32> to vector<8x8xf32>
    %46 = vector.extract_strided_slice %27 {offsets = [8, 16], sizes = [8, 8], strides = [1, 1]} : vector<16x96xf32> to vector<8x8xf32>
    %47 = vector.extract_strided_slice %27 {offsets = [8, 48], sizes = [8, 8], strides = [1, 1]} : vector<16x96xf32> to vector<8x8xf32>
    %48 = vector.extract_strided_slice %27 {offsets = [8, 80], sizes = [8, 8], strides = [1, 1]} : vector<16x96xf32> to vector<8x8xf32>
    %49 = vector.extract_strided_slice %27 {offsets = [8, 24], sizes = [8, 8], strides = [1, 1]} : vector<16x96xf32> to vector<8x8xf32>
    %50 = vector.extract_strided_slice %27 {offsets = [8, 56], sizes = [8, 8], strides = [1, 1]} : vector<16x96xf32> to vector<8x8xf32>
    %51 = vector.extract_strided_slice %27 {offsets = [8, 88], sizes = [8, 8], strides = [1, 1]} : vector<16x96xf32> to vector<8x8xf32>
    %52 = vector.shape_cast %28 : vector<8x8xf32> to vector<1x8x8xf32>
    %53 = vector.shape_cast %31 : vector<8x8xf32> to vector<1x8x8xf32>
    %54 = vector.shape_cast %34 : vector<8x8xf32> to vector<1x8x8xf32>
    %55 = vector.shape_cast %37 : vector<8x8xf32> to vector<1x8x8xf32>
    %56 = vector.shape_cast %40 : vector<8x8xf32> to vector<1x8x8xf32>
    %57 = vector.shape_cast %43 : vector<8x8xf32> to vector<1x8x8xf32>
    %58 = vector.shape_cast %46 : vector<8x8xf32> to vector<1x8x8xf32>
    %59 = vector.shape_cast %49 : vector<8x8xf32> to vector<1x8x8xf32>
    %60 = tpu.concatenate %52, %53, %54, %55, %56, %57, %58, %59 in 0 : vector<1x8x8xf32>, vector<1x8x8xf32>, vector<1x8x8xf32>, vector<1x8x8xf32>, vector<1x8x8xf32>, vector<1x8x8xf32>, vector<1x8x8xf32>, vector<1x8x8xf32> -> vector<8x8x8xf32>
    %61 = vector.shape_cast %29 : vector<8x8xf32> to vector<1x8x8xf32>
    %62 = vector.shape_cast %32 : vector<8x8xf32> to vector<1x8x8xf32>
    %63 = vector.shape_cast %35 : vector<8x8xf32> to vector<1x8x8xf32>
    %64 = vector.shape_cast %38 : vector<8x8xf32> to vector<1x8x8xf32>
    %65 = vector.shape_cast %41 : vector<8x8xf32> to vector<1x8x8xf32>
    %66 = vector.shape_cast %44 : vector<8x8xf32> to vector<1x8x8xf32>
    %67 = vector.shape_cast %47 : vector<8x8xf32> to vector<1x8x8xf32>
    %68 = vector.shape_cast %50 : vector<8x8xf32> to vector<1x8x8xf32>
    %69 = tpu.concatenate %61, %62, %63, %64, %65, %66, %67, %68 in 0 : vector<1x8x8xf32>, vector<1x8x8xf32>, vector<1x8x8xf32>, vector<1x8x8xf32>, vector<1x8x8xf32>, vector<1x8x8xf32>, vector<1x8x8xf32>, vector<1x8x8xf32> -> vector<8x8x8xf32>
    %70 = vector.shape_cast %30 : vector<8x8xf32> to vector<1x8x8xf32>
    %71 = vector.shape_cast %33 : vector<8x8xf32> to vector<1x8x8xf32>
    %72 = vector.shape_cast %36 : vector<8x8xf32> to vector<1x8x8xf32>
    %73 = vector.shape_cast %39 : vector<8x8xf32> to vector<1x8x8xf32>
    %74 = vector.shape_cast %42 : vector<8x8xf32> to vector<1x8x8xf32>
    %75 = vector.shape_cast %45 : vector<8x8xf32> to vector<1x8x8xf32>
    %76 = vector.shape_cast %48 : vector<8x8xf32> to vector<1x8x8xf32>
    %77 = vector.shape_cast %51 : vector<8x8xf32> to vector<1x8x8xf32>
    %78 = tpu.concatenate %70, %71, %72, %73, %74, %75, %76, %77 in 0 : vector<1x8x8xf32>, vector<1x8x8xf32>, vector<1x8x8xf32>, vector<1x8x8xf32>, vector<1x8x8xf32>, vector<1x8x8xf32>, vector<1x8x8xf32>, vector<1x8x8xf32> -> vector<8x8x8xf32>
    "tpu.trace_start"() <{level = 10 : i32, message = "bqd,bkd->bqk"}> : () -> ()
    %cst_29 = arith.constant dense<0.000000e+00> : vector<8x8x8xf32>
    %79 = tpu.matmul %60, %69, %cst_29 {dimension_numbers = #tpu.dot_dimension_numbers<[2], [2], [1], [1], [0, 0, 0, 1, 1, 1], [0], [0]>} : vector<8x8x8xf32>, vector<8x8x8xf32>, vector<8x8x8xf32> -> vector<8x8x8xf32>
    "tpu.trace_stop"() : () -> ()
    %cst_30 = arith.constant 0.353553385 : f32
    %80 = vector.broadcast %cst_30 : f32 to vector<8x8x8xf32>
    %81 = arith.mulf %79, %80 : vector<8x8x8xf32>
    %cst_31 = arith.constant dense<0xFF800000> : vector<8x8xf32>
    %82 = vector.multi_reduction <maximumf>, %81, %cst_31 [2] : vector<8x8x8xf32> to vector<8x8xf32>
    %83 = vector.shape_cast %82 : vector<8x8xf32> to vector<8x8x1xf32>
    %84 = vector.broadcast %83 : vector<8x8x1xf32> to vector<8x8x8xf32>
    %85 = arith.subf %81, %84 : vector<8x8x8xf32>
    %86 = math.exp %85 : vector<8x8x8xf32>
    %cst_32 = arith.constant dense<0.000000e+00> : vector<8x8xf32>
    %87 = vector.multi_reduction <add>, %86, %cst_32 [2] : vector<8x8x8xf32> to vector<8x8xf32>
    %88 = vector.shape_cast %87 : vector<8x8xf32> to vector<8x8x1xf32>
    "tpu.trace_start"() <{level = 10 : i32, message = "bqk,bkd->bqd"}> : () -> ()
    %cst_33 = arith.constant dense<0.000000e+00> : vector<8x8x8xf32>
    %89 = tpu.matmul %86, %78, %cst_33 {dimension_numbers = #tpu.dot_dimension_numbers<[2], [1], [1], [2], [0, 0, 0, 1, 1, 2], [0], [0]>} : vector<8x8x8xf32>, vector<8x8x8xf32>, vector<8x8x8xf32> -> vector<8x8x8xf32>
    "tpu.trace_stop"() : () -> ()
    %90 = tpu.reciprocal %88 : vector<8x8x1xf32> -> vector<8x8x1xf32>
    %91 = vector.broadcast %90 : vector<8x8x1xf32> to vector<8x8x8xf32>
    %92 = arith.mulf %89, %91 : vector<8x8x8xf32>
    %cst_34 = arith.constant 0.000000e+00 : f32
    %93 = vector.broadcast %cst_34 : f32 to vector<8x32xf32>
    %94 = vector.extract_strided_slice %92 {offsets = [0, 0, 0], sizes = [1, 8, 8], strides = [1, 1, 1]} : vector<8x8x8xf32> to vector<1x8x8xf32>
    %95 = vector.shape_cast %94 : vector<1x8x8xf32> to vector<8x8xf32>
    %96 = vector.extract_strided_slice %22 {offsets = [0, 0], sizes = [8, 32], strides = [1, 1]} : vector<32x32xf32> to vector<8x32xf32>
    %cst_35 = arith.constant dense<0.000000e+00> : vector<8x32xf32>
    %97 = tpu.matmul %95, %96, %cst_35 {dimension_numbers = #tpu.dot_dimension_numbers<[1], [0], [0], [1], [0, 0, 1, 1], [], []>} : vector<8x8xf32>, vector<8x32xf32>, vector<8x32xf32> -> vector<8x32xf32>
    %98 = arith.addf %93, %97 : vector<8x32xf32>
    %99 = vector.extract_strided_slice %92 {offsets = [1, 0, 0], sizes = [1, 8, 8], strides = [1, 1, 1]} : vector<8x8x8xf32> to vector<1x8x8xf32>
    %100 = vector.shape_cast %99 : vector<1x8x8xf32> to vector<8x8xf32>
    %101 = vector.extract_strided_slice %22 {offsets = [8, 0], sizes = [8, 32], strides = [1, 1]} : vector<32x32xf32> to vector<8x32xf32>
    %cst_36 = arith.constant dense<0.000000e+00> : vector<8x32xf32>
    %102 = tpu.matmul %100, %101, %cst_36 {dimension_numbers = #tpu.dot_dimension_numbers<[1], [0], [0], [1], [0, 0, 1, 1], [], []>} : vector<8x8xf32>, vector<8x32xf32>, vector<8x32xf32> -> vector<8x32xf32>
    %103 = arith.addf %98, %102 : vector<8x32xf32>
    %104 = vector.extract_strided_slice %92 {offsets = [2, 0, 0], sizes = [1, 8, 8], strides = [1, 1, 1]} : vector<8x8x8xf32> to vector<1x8x8xf32>
    %105 = vector.shape_cast %104 : vector<1x8x8xf32> to vector<8x8xf32>
    %106 = vector.extract_strided_slice %22 {offsets = [16, 0], sizes = [8, 32], strides = [1, 1]} : vector<32x32xf32> to vector<8x32xf32>
    %cst_37 = arith.constant dense<0.000000e+00> : vector<8x32xf32>
    %107 = tpu.matmul %105, %106, %cst_37 {dimension_numbers = #tpu.dot_dimension_numbers<[1], [0], [0], [1], [0, 0, 1, 1], [], []>} : vector<8x8xf32>, vector<8x32xf32>, vector<8x32xf32> -> vector<8x32xf32>
    %108 = arith.addf %103, %107 : vector<8x32xf32>
    %109 = vector.extract_strided_slice %92 {offsets = [3, 0, 0], sizes = [1, 8, 8], strides = [1, 1, 1]} : vector<8x8x8xf32> to vector<1x8x8xf32>
    %110 = vector.shape_cast %109 : vector<1x8x8xf32> to vector<8x8xf32>
    %111 = vector.extract_strided_slice %22 {offsets = [24, 0], sizes = [8, 32], strides = [1, 1]} : vector<32x32xf32> to vector<8x32xf32>
    %cst_38 = arith.constant dense<0.000000e+00> : vector<8x32xf32>
    %112 = tpu.matmul %110, %111, %cst_38 {dimension_numbers = #tpu.dot_dimension_numbers<[1], [0], [0], [1], [0, 0, 1, 1], [], []>} : vector<8x8xf32>, vector<8x32xf32>, vector<8x32xf32> -> vector<8x32xf32>
    %113 = arith.addf %108, %112 : vector<8x32xf32>
    %cst_39 = arith.constant 0.000000e+00 : f32
    %114 = vector.broadcast %cst_39 : f32 to vector<8x32xf32>
    %115 = vector.extract_strided_slice %92 {offsets = [4, 0, 0], sizes = [1, 8, 8], strides = [1, 1, 1]} : vector<8x8x8xf32> to vector<1x8x8xf32>
    %116 = vector.shape_cast %115 : vector<1x8x8xf32> to vector<8x8xf32>
    %117 = vector.extract_strided_slice %22 {offsets = [0, 0], sizes = [8, 32], strides = [1, 1]} : vector<32x32xf32> to vector<8x32xf32>
    %cst_40 = arith.constant dense<0.000000e+00> : vector<8x32xf32>
    %118 = tpu.matmul %116, %117, %cst_40 {dimension_numbers = #tpu.dot_dimension_numbers<[1], [0], [0], [1], [0, 0, 1, 1], [], []>} : vector<8x8xf32>, vector<8x32xf32>, vector<8x32xf32> -> vector<8x32xf32>
    %119 = arith.addf %114, %118 : vector<8x32xf32>
    %120 = vector.extract_strided_slice %92 {offsets = [5, 0, 0], sizes = [1, 8, 8], strides = [1, 1, 1]} : vector<8x8x8xf32> to vector<1x8x8xf32>
    %121 = vector.shape_cast %120 : vector<1x8x8xf32> to vector<8x8xf32>
    %122 = vector.extract_strided_slice %22 {offsets = [8, 0], sizes = [8, 32], strides = [1, 1]} : vector<32x32xf32> to vector<8x32xf32>
    %cst_41 = arith.constant dense<0.000000e+00> : vector<8x32xf32>
    %123 = tpu.matmul %121, %122, %cst_41 {dimension_numbers = #tpu.dot_dimension_numbers<[1], [0], [0], [1], [0, 0, 1, 1], [], []>} : vector<8x8xf32>, vector<8x32xf32>, vector<8x32xf32> -> vector<8x32xf32>
    %124 = arith.addf %119, %123 : vector<8x32xf32>
    %125 = vector.extract_strided_slice %92 {offsets = [6, 0, 0], sizes = [1, 8, 8], strides = [1, 1, 1]} : vector<8x8x8xf32> to vector<1x8x8xf32>
    %126 = vector.shape_cast %125 : vector<1x8x8xf32> to vector<8x8xf32>
    %127 = vector.extract_strided_slice %22 {offsets = [16, 0], sizes = [8, 32], strides = [1, 1]} : vector<32x32xf32> to vector<8x32xf32>
    %cst_42 = arith.constant dense<0.000000e+00> : vector<8x32xf32>
    %128 = tpu.matmul %126, %127, %cst_42 {dimension_numbers = #tpu.dot_dimension_numbers<[1], [0], [0], [1], [0, 0, 1, 1], [], []>} : vector<8x8xf32>, vector<8x32xf32>, vector<8x32xf32> -> vector<8x32xf32>
    %129 = arith.addf %124, %128 : vector<8x32xf32>
    %130 = vector.extract_strided_slice %92 {offsets = [7, 0, 0], sizes = [1, 8, 8], strides = [1, 1, 1]} : vector<8x8x8xf32> to vector<1x8x8xf32>
    %131 = vector.shape_cast %130 : vector<1x8x8xf32> to vector<8x8xf32>
    %132 = vector.extract_strided_slice %22 {offsets = [24, 0], sizes = [8, 32], strides = [1, 1]} : vector<32x32xf32> to vector<8x32xf32>
    %cst_43 = arith.constant dense<0.000000e+00> : vector<8x32xf32>
    %133 = tpu.matmul %131, %132, %cst_43 {dimension_numbers = #tpu.dot_dimension_numbers<[1], [0], [0], [1], [0, 0, 1, 1], [], []>} : vector<8x8xf32>, vector<8x32xf32>, vector<8x32xf32> -> vector<8x32xf32>
    %134 = arith.addf %129, %133 : vector<8x32xf32>
    %135 = tpu.concatenate %113, %134 in 0 : vector<8x32xf32>, vector<8x32xf32> -> vector<16x32xf32>
    %136 = vector.broadcast %6 : vector<1x32xf32> to vector<16x32xf32>
    %137 = arith.addf %135, %136 : vector<16x32xf32>
    %138 = arith.addf %0, %137 : vector<16x32xf32>
    %cst_44 = arith.constant dense<0.000000e+00> : vector<16xf32>
    %139 = vector.multi_reduction <add>, %138, %cst_44 [1] : vector<16x32xf32> to vector<16xf32>
    %140 = vector.shape_cast %139 : vector<16xf32> to vector<16x1xf32>
    %cst_45 = arith.constant 3.200000e+01 : f32
    %141 = vector.broadcast %cst_45 : f32 to vector<16x1xf32>
    %142 = arith.divf %140, %141 : vector<16x1xf32>
    %143 = vector.broadcast %142 : vector<16x1xf32> to vector<16x32xf32>
    %144 = arith.subf %138, %143 : vector<16x32xf32>
    %145 = arith.mulf %144, %144 : vector<16x32xf32>
    %cst_46 = arith.constant dense<0.000000e+00> : vector<16xf32>
    %146 = vector.multi_reduction <add>, %145, %cst_46 [1] : vector<16x32xf32> to vector<16xf32>
    %147 = vector.shape_cast %146 : vector<16xf32> to vector<16x1xf32>
    %cst_47 = arith.constant 3.200000e+01 : f32
    %148 = vector.broadcast %cst_47 : f32 to vector<16x1xf32>
    %149 = arith.divf %147, %148 : vector<16x1xf32>
    %150 = vector.broadcast %142 : vector<16x1xf32> to vector<16x32xf32>
    %151 = arith.subf %138, %150 : vector<16x32xf32>
    %cst_48 = arith.constant 9.99999974E-6 : f32
    %152 = vector.broadcast %cst_48 : f32 to vector<16x1xf32>
    %153 = arith.addf %149, %152 : vector<16x1xf32>
    %154 = math.rsqrt %153 : vector<16x1xf32>
    %155 = vector.broadcast %154 : vector<16x1xf32> to vector<16x32xf32>
    %156 = arith.mulf %151, %155 : vector<16x32xf32>
    %157 = vector.broadcast %12 : vector<1x32xf32> to vector<16x32xf32>
    %158 = arith.mulf %156, %157 : vector<16x32xf32>
    %159 = vector.broadcast %14 : vector<1x32xf32> to vector<16x32xf32>
    %160 = arith.addf %158, %159 : vector<16x32xf32>
    %cst_49 = arith.constant dense<0.000000e+00> : vector<16x64xf32>
    %161 = tpu.matmul %160, %20, %cst_49 {dimension_numbers = #tpu.dot_dimension_numbers<[1], [0], [0], [1], [0, 0, 1, 1], [], []>} : vector<16x32xf32>, vector<32x64xf32>, vector<16x64xf32> -> vector<16x64xf32>
    %162 = vector.broadcast %8 : vector<1x64xf32> to vector<16x64xf32>
    %163 = arith.addf %161, %162 : vector<16x64xf32>
    %cst_50 = arith.constant 0.000000e+00 : f32
    %164 = vector.broadcast %cst_50 : f32 to vector<16x64xf32>
    %165 = arith.maximumf %163, %164 : vector<16x64xf32>
    %cst_51 = arith.constant dense<0.000000e+00> : vector<16x32xf32>
    %166 = tpu.matmul %165, %24, %cst_51 {dimension_numbers = #tpu.dot_dimension_numbers<[1], [0], [0], [1], [0, 0, 1, 1], [], []>} : vector<16x64xf32>, vector<64x32xf32>, vector<16x32xf32> -> vector<16x32xf32>
    %167 = vector.broadcast %10 : vector<1x32xf32> to vector<16x32xf32>
    %168 = arith.addf %166, %167 : vector<16x32xf32>
    %169 = arith.addf %160, %168 : vector<16x32xf32>
    %cst_52 = arith.constant dense<0.000000e+00> : vector<16xf32>
    %170 = vector.multi_reduction <add>, %169, %cst_52 [1] : vector<16x32xf32> to vector<16xf32>
    %171 = vector.shape_cast %170 : vector<16xf32> to vector<16x1xf32>
    %cst_53 = arith.constant 3.200000e+01 : f32
    %172 = vector.broadcast %cst_53 : f32 to vector<16x1xf32>
    %173 = arith.divf %171, %172 : vector<16x1xf32>
    %174 = vector.broadcast %173 : vector<16x1xf32> to vector<16x32xf32>
    %175 = arith.subf %169, %174 : vector<16x32xf32>
    %176 = arith.mulf %175, %175 : vector<16x32xf32>
    %cst_54 = arith.constant dense<0.000000e+00> : vector<16xf32>
    %177 = vector.multi_reduction <add>, %176, %cst_54 [1] : vector<16x32xf32> to vector<16xf32>
    %178 = vector.shape_cast %177 : vector<16xf32> to vector<16x1xf32>
    %cst_55 = arith.constant 3.200000e+01 : f32
    %179 = vector.broadcast %cst_55 : f32 to vector<16x1xf32>
    %180 = arith.divf %178, %179 : vector<16x1xf32>
    %181 = vector.broadcast %173 : vector<16x1xf32> to vector<16x32xf32>
    %182 = arith.subf %169, %181 : vector<16x32xf32>
    %cst_56 = arith.constant 9.99999974E-6 : f32
    %183 = vector.broadcast %cst_56 : f32 to vector<16x1xf32>
    %184 = arith.addf %180, %183 : vector<16x1xf32>
    %185 = math.rsqrt %184 : vector<16x1xf32>
    %186 = vector.broadcast %185 : vector<16x1xf32> to vector<16x32xf32>
    %187 = arith.mulf %182, %186 : vector<16x32xf32>
    %188 = vector.broadcast %16 : vector<1x32xf32> to vector<16x32xf32>
    %189 = arith.mulf %187, %188 : vector<16x32xf32>
    %190 = vector.broadcast %18 : vector<1x32xf32> to vector<16x32xf32>
    %191 = arith.addf %189, %190 : vector<16x32xf32>
    %c1 = arith.constant 1 : index
    %c0_57 = arith.constant 0 : index
    %c0_58 = arith.constant 0 : index
    %192 = vector.load %arg1[%c1, %c0_57, %c0_58] : memref<2x40x96xf32, #tpu.memory_space<vmem>>, vector<1x32x96xf32>
    %193 = vector.shape_cast %192 : vector<1x32x96xf32> to vector<32x96xf32>
    %c1_59 = arith.constant 1 : index
    %c32_60 = arith.constant 32 : index
    %c0_61 = arith.constant 0 : index
    %194 = vector.load %arg1[%c1_59, %c32_60, %c0_61] : memref<2x40x96xf32, #tpu.memory_space<vmem>>, vector<1x1x96xf32>
    %195 = vector.shape_cast %194 : vector<1x1x96xf32> to vector<1x96xf32>
    %c1_62 = arith.constant 1 : index
    %c33_63 = arith.constant 33 : index
    %c0_64 = arith.constant 0 : index
    %196 = vector.load %arg1[%c1_62, %c33_63, %c0_64] : memref<2x40x96xf32, #tpu.memory_space<vmem>>, vector<1x1x32xf32>
    %197 = vector.shape_cast %196 : vector<1x1x32xf32> to vector<1x32xf32>
    %c1_65 = arith.constant 1 : index
    %c34_66 = arith.constant 34 : index
    %c0_67 = arith.constant 0 : index
    %198 = vector.load %arg1[%c1_65, %c34_66, %c0_67] : memref<2x40x96xf32, #tpu.memory_space<vmem>>, vector<1x1x64xf32>
    %199 = vector.shape_cast %198 : vector<1x1x64xf32> to vector<1x64xf32>
    %c1_68 = arith.constant 1 : index
    %c35_69 = arith.constant 35 : index
    %c0_70 = arith.constant 0 : index
    %200 = vector.load %arg1[%c1_68, %c35_69, %c0_70] : memref<2x40x96xf32, #tpu.memory_space<vmem>>, vector<1x1x32xf32>
    %201 = vector.shape_cast %200 : vector<1x1x32xf32> to vector<1x32xf32>
    %c1_71 = arith.constant 1 : index
    %c36_72 = arith.constant 36 : index
    %c0_73 = arith.constant 0 : index
    %202 = vector.load %arg1[%c1_71, %c36_72, %c0_73] : memref<2x40x96xf32, #tpu.memory_space<vmem>>, vector<1x1x32xf32>
    %203 = vector.shape_cast %202 : vector<1x1x32xf32> to vector<1x32xf32>
    %c1_74 = arith.constant 1 : index
    %c37_75 = arith.constant 37 : index
    %c0_76 = arith.constant 0 : index
    %204 = vector.load %arg1[%c1_74, %c37_75, %c0_76] : memref<2x40x96xf32, #tpu.memory_space<vmem>>, vector<1x1x32xf32>
    %205 = vector.shape_cast %204 : vector<1x1x32xf32> to vector<1x32xf32>
    %c1_77 = arith.constant 1 : index
    %c38_78 = arith.constant 38 : index
    %c0_79 = arith.constant 0 : index
    %206 = vector.load %arg1[%c1_77, %c38_78, %c0_79] : memref<2x40x96xf32, #tpu.memory_space<vmem>>, vector<1x1x32xf32>
    %207 = vector.shape_cast %206 : vector<1x1x32xf32> to vector<1x32xf32>
    %c1_80 = arith.constant 1 : index
    %c39_81 = arith.constant 39 : index
    %c0_82 = arith.constant 0 : index
    %208 = vector.load %arg1[%c1_80, %c39_81, %c0_82] : memref<2x40x96xf32, #tpu.memory_space<vmem>>, vector<1x1x32xf32>
    %209 = vector.shape_cast %208 : vector<1x1x32xf32> to vector<1x32xf32>
    %c1_83 = arith.constant 1 : index
    %c0_84 = arith.constant 0 : index
    %c0_85 = arith.constant 0 : index
    %210 = vector.load %arg2[%c1_83, %c0_84, %c0_85] : memref<2x32x64xf32, #tpu.memory_space<vmem>>, vector<1x32x64xf32>
    %211 = vector.shape_cast %210 : vector<1x32x64xf32> to vector<32x64xf32>
    %c1_86 = arith.constant 1 : index
    %c0_87 = arith.constant 0 : index
    %c0_88 = arith.constant 0 : index
    %212 = vector.load %arg3[%c1_86, %c0_87, %c0_88] : memref<2x96x32xf32, #tpu.memory_space<vmem>>, vector<1x32x32xf32>
    %213 = vector.shape_cast %212 : vector<1x32x32xf32> to vector<32x32xf32>
    %c1_89 = arith.constant 1 : index
    %c32_90 = arith.constant 32 : index
    %c0_91 = arith.constant 0 : index
    %214 = vector.load %arg3[%c1_89, %c32_90, %c0_91] : memref<2x96x32xf32, #tpu.memory_space<vmem>>, vector<1x64x32xf32>
    %215 = vector.shape_cast %214 : vector<1x64x32xf32> to vector<64x32xf32>
    %cst_92 = arith.constant dense<0.000000e+00> : vector<16x96xf32>
    %216 = tpu.matmul %191, %193, %cst_92 {dimension_numbers = #tpu.dot_dimension_numbers<[1], [0], [0], [1], [0, 0, 1, 1], [], []>} : vector<16x32xf32>, vector<32x96xf32>, vector<16x96xf32> -> vector<16x96xf32>
    %217 = vector.broadcast %195 : vector<1x96xf32> to vector<16x96xf32>
    %218 = arith.addf %216, %217 : vector<16x96xf32>
    %219 = vector.extract_strided_slice %218 {offsets = [0, 0], sizes = [8, 8], strides = [1, 1]} : vector<16x96xf32> to vector<8x8xf32>
    %220 = vector.extract_strided_slice %218 {offsets = [0, 32], sizes = [8, 8], strides = [1, 1]} : vector<16x96xf32> to vector<8x8xf32>
    %221 = vector.extract_strided_slice %218 {offsets = [0, 64], sizes = [8, 8], strides = [1, 1]} : vector<16x96xf32> to vector<8x8xf32>
    %222 = vector.extract_strided_slice %218 {offsets = [0, 8], sizes = [8, 8], strides = [1, 1]} : vector<16x96xf32> to vector<8x8xf32>
    %223 = vector.extract_strided_slice %218 {offsets = [0, 40], sizes = [8, 8], strides = [1, 1]} : vector<16x96xf32> to vector<8x8xf32>
    %224 = vector.extract_strided_slice %218 {offsets = [0, 72], sizes = [8, 8], strides = [1, 1]} : vector<16x96xf32> to vector<8x8xf32>
    %225 = vector.extract_strided_slice %218 {offsets = [0, 16], sizes = [8, 8], strides = [1, 1]} : vector<16x96xf32> to vector<8x8xf32>
    %226 = vector.extract_strided_slice %218 {offsets = [0, 48], sizes = [8, 8], strides = [1, 1]} : vector<16x96xf32> to vector<8x8xf32>
    %227 = vector.extract_strided_slice %218 {offsets = [0, 80], sizes = [8, 8], strides = [1, 1]} : vector<16x96xf32> to vector<8x8xf32>
    %228 = vector.extract_strided_slice %218 {offsets = [0, 24], sizes = [8, 8], strides = [1, 1]} : vector<16x96xf32> to vector<8x8xf32>
    %229 = vector.extract_strided_slice %218 {offsets = [0, 56], sizes = [8, 8], strides = [1, 1]} : vector<16x96xf32> to vector<8x8xf32>
    %230 = vector.extract_strided_slice %218 {offsets = [0, 88], sizes = [8, 8], strides = [1, 1]} : vector<16x96xf32> to vector<8x8xf32>
    %231 = vector.extract_strided_slice %218 {offsets = [8, 0], sizes = [8, 8], strides = [1, 1]} : vector<16x96xf32> to vector<8x8xf32>
    %232 = vector.extract_strided_slice %218 {offsets = [8, 32], sizes = [8, 8], strides = [1, 1]} : vector<16x96xf32> to vector<8x8xf32>
    %233 = vector.extract_strided_slice %218 {offsets = [8, 64], sizes = [8, 8], strides = [1, 1]} : vector<16x96xf32> to vector<8x8xf32>
    %234 = vector.extract_strided_slice %218 {offsets = [8, 8], sizes = [8, 8], strides = [1, 1]} : vector<16x96xf32> to vector<8x8xf32>
    %235 = vector.extract_strided_slice %218 {offsets = [8, 40], sizes = [8, 8], strides = [1, 1]} : vector<16x96xf32> to vector<8x8xf32>
    %236 = vector.extract_strided_slice %218 {offsets = [8, 72], sizes = [8, 8], strides = [1, 1]} : vector<16x96xf32> to vector<8x8xf32>
    %237 = vector.extract_strided_slice %218 {offsets = [8, 16], sizes = [8, 8], strides = [1, 1]} : vector<16x96xf32> to vector<8x8xf32>
    %238 = vector.extract_strided_slice %218 {offsets = [8, 48], sizes = [8, 8], strides = [1, 1]} : vector<16x96xf32> to vector<8x8xf32>
    %239 = vector.extract_strided_slice %218 {offsets = [8, 80], sizes = [8, 8], strides = [1, 1]} : vector<16x96xf32> to vector<8x8xf32>
    %240 = vector.extract_strided_slice %218 {offsets = [8, 24], sizes = [8, 8], strides = [1, 1]} : vector<16x96xf32> to vector<8x8xf32>
    %241 = vector.extract_strided_slice %218 {offsets = [8, 56], sizes = [8, 8], strides = [1, 1]} : vector<16x96xf32> to vector<8x8xf32>
    %242 = vector.extract_strided_slice %218 {offsets = [8, 88], sizes = [8, 8], strides = [1, 1]} : vector<16x96xf32> to vector<8x8xf32>
    %243 = vector.shape_cast %219 : vector<8x8xf32> to vector<1x8x8xf32>
    %244 = vector.shape_cast %222 : vector<8x8xf32> to vector<1x8x8xf32>
    %245 = vector.shape_cast %225 : vector<8x8xf32> to vector<1x8x8xf32>
    %246 = vector.shape_cast %228 : vector<8x8xf32> to vector<1x8x8xf32>
    %247 = vector.shape_cast %231 : vector<8x8xf32> to vector<1x8x8xf32>
    %248 = vector.shape_cast %234 : vector<8x8xf32> to vector<1x8x8xf32>
    %249 = vector.shape_cast %237 : vector<8x8xf32> to vector<1x8x8xf32>
    %250 = vector.shape_cast %240 : vector<8x8xf32> to vector<1x8x8xf32>
    %251 = tpu.concatenate %243, %244, %245, %246, %247, %248, %249, %250 in 0 : vector<1x8x8xf32>, vector<1x8x8xf32>, vector<1x8x8xf32>, vector<1x8x8xf32>, vector<1x8x8xf32>, vector<1x8x8xf32>, vector<1x8x8xf32>, vector<1x8x8xf32> -> vector<8x8x8xf32>
    %252 = vector.shape_cast %220 : vector<8x8xf32> to vector<1x8x8xf32>
    %253 = vector.shape_cast %223 : vector<8x8xf32> to vector<1x8x8xf32>
    %254 = vector.shape_cast %226 : vector<8x8xf32> to vector<1x8x8xf32>
    %255 = vector.shape_cast %229 : vector<8x8xf32> to vector<1x8x8xf32>
    %256 = vector.shape_cast %232 : vector<8x8xf32> to vector<1x8x8xf32>
    %257 = vector.shape_cast %235 : vector<8x8xf32> to vector<1x8x8xf32>
    %258 = vector.shape_cast %238 : vector<8x8xf32> to vector<1x8x8xf32>
    %259 = vector.shape_cast %241 : vector<8x8xf32> to vector<1x8x8xf32>
    %260 = tpu.concatenate %252, %253, %254, %255, %256, %257, %258, %259 in 0 : vector<1x8x8xf32>, vector<1x8x8xf32>, vector<1x8x8xf32>, vector<1x8x8xf32>, vector<1x8x8xf32>, vector<1x8x8xf32>, vector<1x8x8xf32>, vector<1x8x8xf32> -> vector<8x8x8xf32>
    %261 = vector.shape_cast %221 : vector<8x8xf32> to vector<1x8x8xf32>
    %262 = vector.shape_cast %224 : vector<8x8xf32> to vector<1x8x8xf32>
    %263 = vector.shape_cast %227 : vector<8x8xf32> to vector<1x8x8xf32>
    %264 = vector.shape_cast %230 : vector<8x8xf32> to vector<1x8x8xf32>
    %265 = vector.shape_cast %233 : vector<8x8xf32> to vector<1x8x8xf32>
    %266 = vector.shape_cast %236 : vector<8x8xf32> to vector<1x8x8xf32>
    %267 = vector.shape_cast %239 : vector<8x8xf32> to vector<1x8x8xf32>
    %268 = vector.shape_cast %242 : vector<8x8xf32> to vector<1x8x8xf32>
    %269 = tpu.concatenate %261, %262, %263, %264, %265, %266, %267, %268 in 0 : vector<1x8x8xf32>, vector<1x8x8xf32>, vector<1x8x8xf32>, vector<1x8x8xf32>, vector<1x8x8xf32>, vector<1x8x8xf32>, vector<1x8x8xf32>, vector<1x8x8xf32> -> vector<8x8x8xf32>
    "tpu.trace_start"() <{level = 10 : i32, message = "bqd,bkd->bqk"}> : () -> ()
    %cst_93 = arith.constant dense<0.000000e+00> : vector<8x8x8xf32>
    %270 = tpu.matmul %251, %260, %cst_93 {dimension_numbers = #tpu.dot_dimension_numbers<[2], [2], [1], [1], [0, 0, 0, 1, 1, 1], [0], [0]>} : vector<8x8x8xf32>, vector<8x8x8xf32>, vector<8x8x8xf32> -> vector<8x8x8xf32>
    "tpu.trace_stop"() : () -> ()
    %cst_94 = arith.constant 0.353553385 : f32
    %271 = vector.broadcast %cst_94 : f32 to vector<8x8x8xf32>
    %272 = arith.mulf %270, %271 : vector<8x8x8xf32>
    %cst_95 = arith.constant dense<0xFF800000> : vector<8x8xf32>
    %273 = vector.multi_reduction <maximumf>, %272, %cst_95 [2] : vector<8x8x8xf32> to vector<8x8xf32>
    %274 = vector.shape_cast %273 : vector<8x8xf32> to vector<8x8x1xf32>
    %275 = vector.broadcast %274 : vector<8x8x1xf32> to vector<8x8x8xf32>
    %276 = arith.subf %272, %275 : vector<8x8x8xf32>
    %277 = math.exp %276 : vector<8x8x8xf32>
    %cst_96 = arith.constant dense<0.000000e+00> : vector<8x8xf32>
    %278 = vector.multi_reduction <add>, %277, %cst_96 [2] : vector<8x8x8xf32> to vector<8x8xf32>
    %279 = vector.shape_cast %278 : vector<8x8xf32> to vector<8x8x1xf32>
    "tpu.trace_start"() <{level = 10 : i32, message = "bqk,bkd->bqd"}> : () -> ()
    %cst_97 = arith.constant dense<0.000000e+00> : vector<8x8x8xf32>
    %280 = tpu.matmul %277, %269, %cst_97 {dimension_numbers = #tpu.dot_dimension_numbers<[2], [1], [1], [2], [0, 0, 0, 1, 1, 2], [0], [0]>} : vector<8x8x8xf32>, vector<8x8x8xf32>, vector<8x8x8xf32> -> vector<8x8x8xf32>
    "tpu.trace_stop"() : () -> ()
    %281 = tpu.reciprocal %279 : vector<8x8x1xf32> -> vector<8x8x1xf32>
    %282 = vector.broadcast %281 : vector<8x8x1xf32> to vector<8x8x8xf32>
    %283 = arith.mulf %280, %282 : vector<8x8x8xf32>
    %cst_98 = arith.constant 0.000000e+00 : f32
    %284 = vector.broadcast %cst_98 : f32 to vector<8x32xf32>
    %285 = vector.extract_strided_slice %283 {offsets = [0, 0, 0], sizes = [1, 8, 8], strides = [1, 1, 1]} : vector<8x8x8xf32> to vector<1x8x8xf32>
    %286 = vector.shape_cast %285 : vector<1x8x8xf32> to vector<8x8xf32>
    %287 = vector.extract_strided_slice %213 {offsets = [0, 0], sizes = [8, 32], strides = [1, 1]} : vector<32x32xf32> to vector<8x32xf32>
    %cst_99 = arith.constant dense<0.000000e+00> : vector<8x32xf32>
    %288 = tpu.matmul %286, %287, %cst_99 {dimension_numbers = #tpu.dot_dimension_numbers<[1], [0], [0], [1], [0, 0, 1, 1], [], []>} : vector<8x8xf32>, vector<8x32xf32>, vector<8x32xf32> -> vector<8x32xf32>
    %289 = arith.addf %284, %288 : vector<8x32xf32>
    %290 = vector.extract_strided_slice %283 {offsets = [1, 0, 0], sizes = [1, 8, 8], strides = [1, 1, 1]} : vector<8x8x8xf32> to vector<1x8x8xf32>
    %291 = vector.shape_cast %290 : vector<1x8x8xf32> to vector<8x8xf32>
    %292 = vector.extract_strided_slice %213 {offsets = [8, 0], sizes = [8, 32], strides = [1, 1]} : vector<32x32xf32> to vector<8x32xf32>
    %cst_100 = arith.constant dense<0.000000e+00> : vector<8x32xf32>
    %293 = tpu.matmul %291, %292, %cst_100 {dimension_numbers = #tpu.dot_dimension_numbers<[1], [0], [0], [1], [0, 0, 1, 1], [], []>} : vector<8x8xf32>, vector<8x32xf32>, vector<8x32xf32> -> vector<8x32xf32>
    %294 = arith.addf %289, %293 : vector<8x32xf32>
    %295 = vector.extract_strided_slice %283 {offsets = [2, 0, 0], sizes = [1, 8, 8], strides = [1, 1, 1]} : vector<8x8x8xf32> to vector<1x8x8xf32>
    %296 = vector.shape_cast %295 : vector<1x8x8xf32> to vector<8x8xf32>
    %297 = vector.extract_strided_slice %213 {offsets = [16, 0], sizes = [8, 32], strides = [1, 1]} : vector<32x32xf32> to vector<8x32xf32>
    %cst_101 = arith.constant dense<0.000000e+00> : vector<8x32xf32>
    %298 = tpu.matmul %296, %297, %cst_101 {dimension_numbers = #tpu.dot_dimension_numbers<[1], [0], [0], [1], [0, 0, 1, 1], [], []>} : vector<8x8xf32>, vector<8x32xf32>, vector<8x32xf32> -> vector<8x32xf32>
    %299 = arith.addf %294, %298 : vector<8x32xf32>
    %300 = vector.extract_strided_slice %283 {offsets = [3, 0, 0], sizes = [1, 8, 8], strides = [1, 1, 1]} : vector<8x8x8xf32> to vector<1x8x8xf32>
    %301 = vector.shape_cast %300 : vector<1x8x8xf32> to vector<8x8xf32>
    %302 = vector.extract_strided_slice %213 {offsets = [24, 0], sizes = [8, 32], strides = [1, 1]} : vector<32x32xf32> to vector<8x32xf32>
    %cst_102 = arith.constant dense<0.000000e+00> : vector<8x32xf32>
    %303 = tpu.matmul %301, %302, %cst_102 {dimension_numbers = #tpu.dot_dimension_numbers<[1], [0], [0], [1], [0, 0, 1, 1], [], []>} : vector<8x8xf32>, vector<8x32xf32>, vector<8x32xf32> -> vector<8x32xf32>
    %304 = arith.addf %299, %303 : vector<8x32xf32>
    %cst_103 = arith.constant 0.000000e+00 : f32
    %305 = vector.broadcast %cst_103 : f32 to vector<8x32xf32>
    %306 = vector.extract_strided_slice %283 {offsets = [4, 0, 0], sizes = [1, 8, 8], strides = [1, 1, 1]} : vector<8x8x8xf32> to vector<1x8x8xf32>
    %307 = vector.shape_cast %306 : vector<1x8x8xf32> to vector<8x8xf32>
    %308 = vector.extract_strided_slice %213 {offsets = [0, 0], sizes = [8, 32], strides = [1, 1]} : vector<32x32xf32> to vector<8x32xf32>
    %cst_104 = arith.constant dense<0.000000e+00> : vector<8x32xf32>
    %309 = tpu.matmul %307, %308, %cst_104 {dimension_numbers = #tpu.dot_dimension_numbers<[1], [0], [0], [1], [0, 0, 1, 1], [], []>} : vector<8x8xf32>, vector<8x32xf32>, vector<8x32xf32> -> vector<8x32xf32>
    %310 = arith.addf %305, %309 : vector<8x32xf32>
    %311 = vector.extract_strided_slice %283 {offsets = [5, 0, 0], sizes = [1, 8, 8], strides = [1, 1, 1]} : vector<8x8x8xf32> to vector<1x8x8xf32>
    %312 = vector.shape_cast %311 : vector<1x8x8xf32> to vector<8x8xf32>
    %313 = vector.extract_strided_slice %213 {offsets = [8, 0], sizes = [8, 32], strides = [1, 1]} : vector<32x32xf32> to vector<8x32xf32>
    %cst_105 = arith.constant dense<0.000000e+00> : vector<8x32xf32>
    %314 = tpu.matmul %312, %313, %cst_105 {dimension_numbers = #tpu.dot_dimension_numbers<[1], [0], [0], [1], [0, 0, 1, 1], [], []>} : vector<8x8xf32>, vector<8x32xf32>, vector<8x32xf32> -> vector<8x32xf32>
    %315 = arith.addf %310, %314 : vector<8x32xf32>
    %316 = vector.extract_strided_slice %283 {offsets = [6, 0, 0], sizes = [1, 8, 8], strides = [1, 1, 1]} : vector<8x8x8xf32> to vector<1x8x8xf32>
    %317 = vector.shape_cast %316 : vector<1x8x8xf32> to vector<8x8xf32>
    %318 = vector.extract_strided_slice %213 {offsets = [16, 0], sizes = [8, 32], strides = [1, 1]} : vector<32x32xf32> to vector<8x32xf32>
    %cst_106 = arith.constant dense<0.000000e+00> : vector<8x32xf32>
    %319 = tpu.matmul %317, %318, %cst_106 {dimension_numbers = #tpu.dot_dimension_numbers<[1], [0], [0], [1], [0, 0, 1, 1], [], []>} : vector<8x8xf32>, vector<8x32xf32>, vector<8x32xf32> -> vector<8x32xf32>
    %320 = arith.addf %315, %319 : vector<8x32xf32>
    %321 = vector.extract_strided_slice %283 {offsets = [7, 0, 0], sizes = [1, 8, 8], strides = [1, 1, 1]} : vector<8x8x8xf32> to vector<1x8x8xf32>
    %322 = vector.shape_cast %321 : vector<1x8x8xf32> to vector<8x8xf32>
    %323 = vector.extract_strided_slice %213 {offsets = [24, 0], sizes = [8, 32], strides = [1, 1]} : vector<32x32xf32> to vector<8x32xf32>
    %cst_107 = arith.constant dense<0.000000e+00> : vector<8x32xf32>
    %324 = tpu.matmul %322, %323, %cst_107 {dimension_numbers = #tpu.dot_dimension_numbers<[1], [0], [0], [1], [0, 0, 1, 1], [], []>} : vector<8x8xf32>, vector<8x32xf32>, vector<8x32xf32> -> vector<8x32xf32>
    %325 = arith.addf %320, %324 : vector<8x32xf32>
    %326 = tpu.concatenate %304, %325 in 0 : vector<8x32xf32>, vector<8x32xf32> -> vector<16x32xf32>
    %327 = vector.broadcast %197 : vector<1x32xf32> to vector<16x32xf32>
    %328 = arith.addf %326, %327 : vector<16x32xf32>
    %329 = arith.addf %191, %328 : vector<16x32xf32>
    %cst_108 = arith.constant dense<0.000000e+00> : vector<16xf32>
    %330 = vector.multi_reduction <add>, %329, %cst_108 [1] : vector<16x32xf32> to vector<16xf32>
    %331 = vector.shape_cast %330 : vector<16xf32> to vector<16x1xf32>
    %cst_109 = arith.constant 3.200000e+01 : f32
    %332 = vector.broadcast %cst_109 : f32 to vector<16x1xf32>
    %333 = arith.divf %331, %332 : vector<16x1xf32>
    %334 = vector.broadcast %333 : vector<16x1xf32> to vector<16x32xf32>
    %335 = arith.subf %329, %334 : vector<16x32xf32>
    %336 = arith.mulf %335, %335 : vector<16x32xf32>
    %cst_110 = arith.constant dense<0.000000e+00> : vector<16xf32>
    %337 = vector.multi_reduction <add>, %336, %cst_110 [1] : vector<16x32xf32> to vector<16xf32>
    %338 = vector.shape_cast %337 : vector<16xf32> to vector<16x1xf32>
    %cst_111 = arith.constant 3.200000e+01 : f32
    %339 = vector.broadcast %cst_111 : f32 to vector<16x1xf32>
    %340 = arith.divf %338, %339 : vector<16x1xf32>
    %341 = vector.broadcast %333 : vector<16x1xf32> to vector<16x32xf32>
    %342 = arith.subf %329, %341 : vector<16x32xf32>
    %cst_112 = arith.constant 9.99999974E-6 : f32
    %343 = vector.broadcast %cst_112 : f32 to vector<16x1xf32>
    %344 = arith.addf %340, %343 : vector<16x1xf32>
    %345 = math.rsqrt %344 : vector<16x1xf32>
    %346 = vector.broadcast %345 : vector<16x1xf32> to vector<16x32xf32>
    %347 = arith.mulf %342, %346 : vector<16x32xf32>
    %348 = vector.broadcast %203 : vector<1x32xf32> to vector<16x32xf32>
    %349 = arith.mulf %347, %348 : vector<16x32xf32>
    %350 = vector.broadcast %205 : vector<1x32xf32> to vector<16x32xf32>
    %351 = arith.addf %349, %350 : vector<16x32xf32>
    %cst_113 = arith.constant dense<0.000000e+00> : vector<16x64xf32>
    %352 = tpu.matmul %351, %211, %cst_113 {dimension_numbers = #tpu.dot_dimension_numbers<[1], [0], [0], [1], [0, 0, 1, 1], [], []>} : vector<16x32xf32>, vector<32x64xf32>, vector<16x64xf32> -> vector<16x64xf32>
    %353 = vector.broadcast %199 : vector<1x64xf32> to vector<16x64xf32>
    %354 = arith.addf %352, %353 : vector<16x64xf32>
    %cst_114 = arith.constant 0.000000e+00 : f32
    %355 = vector.broadcast %cst_114 : f32 to vector<16x64xf32>
    %356 = arith.maximumf %354, %355 : vector<16x64xf32>
    %cst_115 = arith.constant dense<0.000000e+00> : vector<16x32xf32>
    %357 = tpu.matmul %356, %215, %cst_115 {dimension_numbers = #tpu.dot_dimension_numbers<[1], [0], [0], [1], [0, 0, 1, 1], [], []>} : vector<16x64xf32>, vector<64x32xf32>, vector<16x32xf32> -> vector<16x32xf32>
    %358 = vector.broadcast %201 : vector<1x32xf32> to vector<16x32xf32>
    %359 = arith.addf %357, %358 : vector<16x32xf32>
    %360 = arith.addf %351, %359 : vector<16x32xf32>
    %cst_116 = arith.constant dense<0.000000e+00> : vector<16xf32>
    %361 = vector.multi_reduction <add>, %360, %cst_116 [1] : vector<16x32xf32> to vector<16xf32>
    %362 = vector.shape_cast %361 : vector<16xf32> to vector<16x1xf32>
    %cst_117 = arith.constant 3.200000e+01 : f32
    %363 = vector.broadcast %cst_117 : f32 to vector<16x1xf32>
    %364 = arith.divf %362, %363 : vector<16x1xf32>
    %365 = vector.broadcast %364 : vector<16x1xf32> to vector<16x32xf32>
    %366 = arith.subf %360, %365 : vector<16x32xf32>
    %367 = arith.mulf %366, %366 : vector<16x32xf32>
    %cst_118 = arith.constant dense<0.000000e+00> : vector<16xf32>
    %368 = vector.multi_reduction <add>, %367, %cst_118 [1] : vector<16x32xf32> to vector<16xf32>
    %369 = vector.shape_cast %368 : vector<16xf32> to vector<16x1xf32>
    %cst_119 = arith.constant 3.200000e+01 : f32
    %370 = vector.broadcast %cst_119 : f32 to vector<16x1xf32>
    %371 = arith.divf %369, %370 : vector<16x1xf32>
    %372 = vector.broadcast %364 : vector<16x1xf32> to vector<16x32xf32>
    %373 = arith.subf %360, %372 : vector<16x32xf32>
    %cst_120 = arith.constant 9.99999974E-6 : f32
    %374 = vector.broadcast %cst_120 : f32 to vector<16x1xf32>
    %375 = arith.addf %371, %374 : vector<16x1xf32>
    %376 = math.rsqrt %375 : vector<16x1xf32>
    %377 = vector.broadcast %376 : vector<16x1xf32> to vector<16x32xf32>
    %378 = arith.mulf %373, %377 : vector<16x32xf32>
    %379 = vector.broadcast %207 : vector<1x32xf32> to vector<16x32xf32>
    %380 = arith.mulf %378, %379 : vector<16x32xf32>
    %381 = vector.broadcast %209 : vector<1x32xf32> to vector<16x32xf32>
    %382 = arith.addf %380, %381 : vector<16x32xf32>
    %c0_121 = arith.constant 0 : index
    %c0_122 = arith.constant 0 : index
    %383 = vector.load %arg4[%c0_121, %c0_122] : memref<16x32xf32, #tpu.memory_space<vmem>>, vector<16x32xf32>
    tpu.vector_store %arg4[%c0_121, %c0_122], %382 {strides = array<i32>} : memref<16x32xf32, #tpu.memory_space<vmem>>, vector<16x32xf32>,
    return
  }
}

</mosaic_0001>

<bundles_post_ra>
// kernel: tpu_custom_call.1
= control target key start
LH: loop header
LB: loop body
LE: loop exit
PB: predicated region body
PF: predicated region fallthrough
CT: control target
= control target key end

     0   :  { %vm52_vm0 = vcmask 261120   ;;  %s5968_s0 = inlined_call_operand.vmem [shape: f32[16,32], index: 0, kind: input, shape index: {}]   ;;  %s5969_s1 = inlined_call_operand.vmem [shape: f32[2,40,96], index: 1, kind: input, shape index: {}]   ;;  %s5970_s2 = inlined_call_operand.vmem [shape: f32[2,32,64], index: 2, kind: input, shape index: {}]   ;;  %s5971_s3 = inlined_call_operand.vmem [shape: f32[2,96,32], index: 3, kind: input, shape index: {}]   ;;  %s5972_s4 = inlined_call_operand.hbm [shape: f32[16,32], index: 4, kind: output, shape index: {}]  }
   0x1   :  { %v20_v0 = vld [vmem:[%s5969_s1] sm:$0xff]  ;;  %v21_v1 = vld [vmem:[%s5969_s1 + $0x8] sm:$0xff]  ;;  %v22_v2 = vld [vmem:[%s5969_s1 + $0x10] sm:$0xff] }
   0x2   :  { %v5197_v3 = vpack.c.bf16 %v21_v1, %v20_v0  ;;  %v23_v4 = vld [vmem:[%s5969_s1 + $0x18] sm:$0xff]  ;;  %v5425_v5 = vld [vmem:[%s5968_s0] sm:$0xff] }
   0x3   :  { %v5201_v6 = vpack.c.bf16 %v23_v4, %v22_v2  ;;  %4883 = vmatprep.mubr.msk.f32.mxu0 %vm52_vm0, %v5425_v5 }
   0x4   :  { %9 = vsyncpa [#allocation3], 0  ;;  %5198 = vmatprep.subr.bf16.mxu0 %v5197_v3  ;;  %v5432_v7 = vld [vmem:[%s5968_s0 + $0x8] sm:$0xff]  ;;  %v4615_v8 = vld [vmem:[%s5969_s1 + $0x20] ss:$0 sm:$0xff]  ;;  %v5375_v10 = vmov 0.0  }
   0x5   :  { %5200 = vmatpush3.bf16.msra.mxu0 %v5197_v3  ;;  %4891 = vmatprep.subr.mxu1 %v5375_v10  ;;  %s5376_s29 = smov 104   ;;  %s5377_s0 = smov 120   ;;  %vm5378_vm1 = vmmov 0   ;;  %vm150_vm2 = vcmask 64512   ;;  %vm2187_vm3 = vcmask 523264  }
   0x6   :  { %5202 = vmatprep.subr.bf16.mxu0 %v5201_v6  ;;  %4893 = vmatprep.mubr.msk.f32.mxu1 %vm5378_vm1, %v5375_v10  ;;  %s5379_s30 = smov 112   ;;  %s5380_s5 = smov 96  }
   0x7   :  { %s5381_s6 = smov 64   ;;  %s5382_s9 = smov [#allocation2]  }
   0x8   :  { %s4604_s10 = sshll.u32 %s5382_s9, 4  ;;  %s4605_s10 = int_to_ptr.vmem [resolvable:$true] %s4604_s10 }
   0x9   :  { %5204 = vmatpush3.bf16.msra.mxu0 %v5201_v6  ;;  %s5351_s11 = scalar_lea.vmem %s4605_s10, 256  ;;  %p5356_p1 = scmp.lt.s32.totalorder %s4605_s10, %s4605_s10 }
   0xa   :  { %4886 = vmatprep.subr.mxu0 %v5375_v10  ;;  %p5352_p0 = scmp.ne.s32.totalorder %s4605_s10, %s5351_s11  ;;  %p5357_p2 = scmp.lt.s32.totalorder %s5351_s11, %s5351_s11 }
   0xc   :  { %4884 = vmatmul.mubr.msk.f32.vlgmr.msra.gmra.mrb[0].mxu0 %vm52_vm0, %v5432_v7  ;;  %p5358_p3 = por %p5357_p2, %p5356_p1 }
   0xd   :  { %4888 = vmatprep.mubr.msk.f32.mxu0 %vm5378_vm1, %v5375_v10 }
   0xe   :  { %p5359_p4 = pnand %p5358_p3, %p5352_p0 }
  0xdf   :  { %v4885_v9 = vpop.f32.mrb[0].mxu0 }
  0xe0   :  { %v125_v11 = vpop.f32.mrb[1].mxu0  ;;  %v131_v13 = vadd.f32 %v4885_v9, %v4615_v8 }
  0xe1   :  { %v126_v12 = vadd.f32 %v4615_v8, %v125_v11 }
  0xe3   :  { %139 = vrot.lane.b32.xlu1 %v126_v12, %s5376_s29  ;;  %135 = vrot.lane.b32.xlu0 %v126_v12, %s5377_s0 }
  0xe7   :  { %142 = vrot.lane.b32.xlu1 %v131_v13, %s5377_s0  ;;  %137 = vrot.lane.b32.xlu0 %v126_v12, %s5379_s30 }
  0xeb   :  { %146 = vrot.lane.b32.xlu1 %v131_v13, %s5376_s29  ;;  %144 = vrot.lane.b32.xlu0 %v131_v13, %s5379_s30 }
  0xef   :  { %148 = vrot.lane.b32.xlu0 %v126_v12, %s5380_s5 }
 0x155   :  { %v140_v14 = vpop.permute.xlu1 %139  ;;  %v136_v15 = vpop.permute.xlu0 %135 }
 0x156   :  { %225 = vrot.lane.b32.xlu1 %v136_v15, %s5380_s5 }
 0x159   :  { %v138_v16 = vpop.permute.xlu0 %137  ;;  %v143_v17 = vpop.permute.xlu1 %142 }
 0x15a   :  { %377 = vrot.lane.b32.xlu1 %v140_v14, %s5380_s5  ;;  %301 = vrot.lane.b32.xlu0 %v138_v16, %s5380_s5 }
 0x15d   :  { %v5455_v18 = vpop.permute.xlu0 %144  ;;  %v5459_v19 = vpop.permute.xlu1 %146 }
 0x15e   :  { %529 = vrot.lane.b32.xlu1 %v143_v17, %s5380_s5  ;;  %453 = vrot.lane.b32.xlu0 %v131_v13, %s5380_s5 }
 0x161   :  { %v149_v20 = vpop.permute.xlu0 %148 }
 0x162   :  { %681 = vrot.lane.b32.xlu1 %v5459_v19, %s5380_s5  ;;  %605 = vrot.lane.b32.xlu0 %v5455_v18, %s5380_s5 }
 0x163   :  { %4887 = vmatpush3.xpose.msk.msra.mxu0 %vm150_vm2, %v149_v20 }
 0x164   :  { %4896 = vmatprep.subr.mxu0 %v5375_v10 }
 0x166   :  { %4889 = vmatmul.mubr.msk.f32.vlgmr.msra.gmra.mrb[2].mxu0 %vm150_vm2, %v126_v12  ;;  %837 = vrot.lane.b32.xlu1 %v126_v12, %s5381_s6 }
 0x167   :  { %1141 = vrot.lane.b32.xlu0 %v131_v13, %s5381_s6  ;;  %4898 = vmatprep.mubr.msk.f32.mxu0 %vm5378_vm1, %v5375_v10 }
 0x16a   :  { %1217 = vrot.lane.b32.xlu1 %v143_v17, %s5381_s6 }
 0x16b   :  { %913 = vrot.lane.b32.xlu0 %v136_v15, %s5381_s6 }
 0x16e   :  { %989 = vrot.lane.b32.xlu1 %v138_v16, %s5381_s6 }
 0x172   :  { %1065 = vrot.lane.b32.xlu1 %v140_v14, %s5381_s6 }
 0x1c8   :  { %v226_v21 = vpop.permute.xlu1 %225 }
 0x1c9   :  { %4892 = vmatpush3.xpose.msk.msra.mxu1 %vm150_vm2, %v226_v21 }
 0x1ca   :  { %4901 = vmatprep.subr.mxu1 %v5375_v10 }
 0x1cc   :  { %4894 = vmatmul.mubr.msk.f32.vlgmr.msra.gmra.mrb[0].mxu1 %vm150_vm2, %v136_v15  ;;  %v378_v22 = vpop.permute.xlu1 %377  ;;  %v302_v23 = vpop.permute.xlu0 %301 }
 0x1cd   :  { %4897 = vmatpush3.xpose.msk.msra.mxu0 %vm150_vm2, %v302_v23  ;;  %4902 = vmatpush3.xpose.msk.msra.mxu1 %vm150_vm2, %v378_v22 }
 0x1ce   :  { %4903 = vmatprep.mubr.msk.f32.mxu1 %vm5378_vm1, %v5375_v10  ;;  %4911 = vmatprep.subr.mxu1 %v5375_v10 }
 0x1cf   :  { %4906 = vmatprep.subr.mxu0 %v5375_v10 }
 0x1d0   :  { %4904 = vmatmul.mubr.msk.f32.vlgmr.msra.gmra.mrb[2].mxu1 %vm150_vm2, %v140_v14  ;;  %v530_v24 = vpop.permute.xlu1 %529  ;;  %4899 = vmatmul.mubr.msk.f32.vlgmr.msra.gmra.mrb[4].mxu0 %vm150_vm2, %v138_v16  ;;  %v454_v25 = vpop.permute.xlu0 %453 }
 0x1d1   :  { %4907 = vmatpush3.xpose.msk.msra.mxu0 %vm150_vm2, %v454_v25  ;;  %4912 = vmatpush3.xpose.msk.msra.mxu1 %vm150_vm2, %v530_v24 }
 0x1d2   :  { %4908 = vmatprep.mubr.msk.f32.mxu0 %vm5378_vm1, %v5375_v10  ;;  %4913 = vmatprep.mubr.msk.f32.mxu1 %vm5378_vm1, %v5375_v10 }
 0x1d3   :  { %4921 = vmatprep.subr.mxu1 %v5375_v10  ;;  %4916 = vmatprep.subr.mxu0 %v5375_v10 }
 0x1d4   :  { %4914 = vmatmul.mubr.msk.f32.vlgmr.msra.gmra.mrb[4].mxu1 %vm150_vm2, %v143_v17  ;;  %v682_v26 = vpop.permute.xlu1 %681  ;;  %4909 = vmatmul.mubr.msk.f32.vlgmr.msra.gmra.mrb[6].mxu0 %vm150_vm2, %v131_v13  ;;  %v606_v27 = vpop.permute.xlu0 %605 }
 0x1d5   :  { %4917 = vmatpush3.xpose.msk.msra.mxu0 %vm150_vm2, %v606_v27  ;;  %4922 = vmatpush3.xpose.msk.msra.mxu1 %vm150_vm2, %v682_v26 }
 0x1d6   :  { %4918 = vmatprep.mubr.msk.f32.mxu0 %vm5378_vm1, %v5375_v10  ;;  %4923 = vmatprep.mubr.msk.f32.mxu1 %vm5378_vm1, %v5375_v10 }
 0x1d7   :  { %4926 = vmatprep.subr.mxu0 %v5375_v10  ;;  %4931 = vmatprep.subr.mxu1 %v5375_v10 }
 0x1d8   :  { %4924 = vmatmul.mubr.msk.f32.vlgmr.msra.gmra.mrb[6].mxu1 %vm150_vm2, %v5459_v19  ;;  %v838_v28 = vpop.permute.xlu1 %837  ;;  %4919 = vmatmul.mubr.msk.f32.vlgmr.msra.gmra.mrb[8].mxu0 %vm150_vm2, %v5455_v18 }
 0x1d9   :  { %v5509_v29 = vpop.permute.xlu0 %1141  ;;  %4927 = vmatpush3.msra.mxu0 %v838_v28  ;;  %4928 = vmatprep.mubr.msk.f32.mxu0 %vm5378_vm1, %v5375_v10 }
 0x1da   :  { %4936 = vmatprep.subr.mxu0 %v5375_v10  ;;  %4933 = vmatprep.mubr.msk.f32.mxu1 %vm5378_vm1, %v5375_v10 }
 0x1dc   :  { %v1218_v2 = vpop.permute.xlu1 %1217 }
 0x1dd   :  { %v914_v30 = vpop.permute.xlu0 %913 }
 0x1de   :  { %4932 = vmatpush3.msra.mxu1 %v914_v30 }
 0x1df   :  { %4941 = vmatprep.subr.mxu1 %v5375_v10 }
 0x1e0   :  { %v990_v4 = vpop.permute.xlu1 %989 }
 0x1e4   :  { %v1066_v8 = vpop.permute.xlu1 %1065 }
 0x239   :  { %v221_v31 = vpop.f32.mrb[2].mxu0 }
 0x23a   :  { %v757_v32 = vmul.f32 0.35355338, %v221_v31  ;;  %v4890_v33 = vpop.f32.mrb[3].mxu0 }
 0x23c   :  { %v765_v34 = vsel %vm150_vm2, %v757_v32, -inf }
 0x23d   :  { %766 = vmax.xlane.f32.xlu0 %v765_v34 }
 0x29f   :  { %v297_v35 = vpop.f32.mrb[0].mxu1 }
 0x2a0   :  { %v758_v36 = vmul.f32 0.35355338, %v297_v35  ;;  %v4895_v37 = vpop.f32.mrb[1].mxu1 }
 0x2a2   :  { %v768_v38 = vsel %vm150_vm2, %v758_v36, -inf }
 0x2a3   :  { %v449_v39 = vpop.f32.mrb[2].mxu1  ;;  %769 = vmax.xlane.f32.xlu1 %v768_v38  ;;  %v373_v40 = vpop.f32.mrb[4].mxu0 }
 0x2a4   :  { %v759_v41 = vmul.f32 0.35355338, %v373_v40  ;;  %v4900_v42 = vpop.f32.mrb[5].mxu0  ;;  %v4905_v43 = vpop.f32.mrb[3].mxu1  ;;  %v760_v44 = vmul.f32 0.35355338, %v449_v39 }
 0x2a6   :  { %v771_v45 = vsel %vm150_vm2, %v759_v41, -inf  ;;  %v774_v52 = vsel %vm150_vm2, %v760_v44, -inf }
 0x2a7   :  { %v601_v46 = vpop.f32.mrb[4].mxu1  ;;  %772 = vmax.xlane.f32.xlu0 %v771_v45  ;;  %v525_v47 = vpop.f32.mrb[6].mxu0  ;;  %v5563_v45 = vld [vmem:[%s5971_s3] sm:$0xff] }
 0x2a8   :  { %v761_v48 = vmul.f32 0.35355338, %v525_v47  ;;  %v4910_v49 = vpop.f32.mrb[7].mxu0  ;;  %v4915_v50 = vpop.f32.mrb[5].mxu1  ;;  %v762_v51 = vmul.f32 0.35355338, %v601_v46 }
 0x2aa   :  { %v777_v53 = vsel %vm150_vm2, %v761_v48, -inf  ;;  %v780_v60 = vsel %vm150_vm2, %v762_v51, -inf }
 0x2ab   :  { %v753_v54 = vpop.f32.mrb[6].mxu1  ;;  %775 = vmax.xlane.f32.xlu0 %v774_v52  ;;  %778 = vmax.xlane.f32.xlu1 %v777_v53  ;;  %v677_v55 = vpop.f32.mrb[8].mxu0 }
 0x2ac   :  { %v763_v56 = vmul.f32 0.35355338, %v677_v55  ;;  %v4920_v57 = vpop.f32.mrb[9].mxu0  ;;  %v4925_v58 = vpop.f32.mrb[7].mxu1  ;;  %v764_v59 = vmul.f32 0.35355338, %v753_v54 }
 0x2ad   :  { %v5582_v54 = vld [vmem:[%s5971_s3 + $0x18] sm:$0xff] }
 0x2ae   :  { %v783_v61 = vsel %vm150_vm2, %v763_v56, -inf  ;;  %v786_v62 = vsel %vm150_vm2, %v764_v59, -inf }
 0x2af   :  { %781 = vmax.xlane.f32.xlu0 %v780_v60  ;;  %784 = vmax.xlane.f32.xlu1 %v783_v61 }
 0x2b3   :  { %787 = vmax.xlane.f32.xlu0 %v786_v62 }
 0x2c0   :  { %1369 = vrot.lane.b32.xlu1 %v5459_v19, %s5381_s6 }
 0x2c9   :  { %1293 = vrot.lane.b32.xlu0 %v5455_v18, %s5381_s6 }
 0x2ca   :  { %v767_v63 = vpop.xlane.xlu0 %766 }
 0x2cb   :  { %v789_v0 = vsub.f32 %v757_v32, %v767_v63 }
 0x2cd   :  { %v797_v1 = vmul.f32 1.442695, %v789_v0  ;;  %v38_v0 = vld [vmem:[%s5971_s3 + $0x10] sm:$0xff] }
 0x2cf   :  { %5271 = vpow2.f32 %v797_v1 }
 0x2d9   :  { %v5272_v3 = vpop.eup %5271 }
 0x2da   :  { %4929 = vmatmul.mubr.msk.f32.vlgmr.msra.gmra.mrb[10].mxu0 %vm150_vm2, %v5272_v3  ;;  %v813_v6 = vsel %vm150_vm2, %v5272_v3, 0.0 }
 0x2db   :  { %4937 = vmatpush3.msra.mxu0 %v990_v4  ;;  %4938 = vmatprep.mubr.msk.f32.mxu0 %vm5378_vm1, %v5375_v10 }
 0x2dc   :  { %4946 = vmatprep.subr.mxu0 %v5375_v10 }
 0x2e4   :  { %814 = vadd.xlane.f32.xlu1 %v813_v6 }
 0x330   :  { %v770_v9 = vpop.xlane.xlu1 %769 }
 0x331   :  { %v790_v11 = vsub.f32 %v758_v36, %v770_v9 }
 0x333   :  { %v799_v12 = vmul.f32 1.442695, %v790_v11 }
 0x334   :  { %v773_v13 = vpop.xlane.xlu0 %772 }
 0x335   :  { %5273 = vpow2.f32 %v799_v12  ;;  %v791_v14 = vsub.f32 %v759_v41, %v773_v13 }
 0x337   :  { %v801_v15 = vmul.f32 1.442695, %v791_v14 }
 0x338   :  { %v779_v16 = vpop.xlane.xlu1 %778  ;;  %v776_v17 = vpop.xlane.xlu0 %775 }
 0x339   :  { %5275 = vpow2.f32 %v801_v15  ;;  %v793_v18 = vsub.f32 %v761_v48, %v779_v16  ;;  %v792_v19 = vsub.f32 %v760_v44, %v776_v17  ;;  %v37_v48 = vld [vmem:[%s5971_s3 + $0x8] sm:$0xff] }
 0x33b   :  { %v805_v20 = vmul.f32 1.442695, %v793_v18  ;;  %v803_v21 = vmul.f32 1.442695, %v792_v19 }
 0x33c   :  { %v785_v22 = vpop.xlane.xlu1 %784  ;;  %v782_v23 = vpop.xlane.xlu0 %781 }
 0x33d   :  { %5277 = vpow2.f32 %v805_v20  ;;  %v795_v24 = vsub.f32 %v763_v56, %v785_v22  ;;  %v794_v25 = vsub.f32 %v762_v51, %v782_v23 }
 0x33e   :  { %5279 = vpow2.f32 %v803_v21 }
 0x33f   :  { %v5274_v26 = vpop.eup %5273  ;;  %v809_v27 = vmul.f32 1.442695, %v795_v24  ;;  %v807_v28 = vmul.f32 1.442695, %v794_v25 }
 0x340   :  { %4934 = vmatmul.mubr.msk.f32.vlgmr.msra.gmra.mrb[8].mxu1 %vm150_vm2, %v5274_v26  ;;  %v788_v30 = vpop.xlane.xlu0 %787  ;;  %v816_v31 = vsel %vm150_vm2, %v5274_v26, 0.0  ;;  %v1370_v41 = vpop.permute.xlu1 %1369 }
 0x341   :  { %5281 = vpow2.f32 %v809_v27  ;;  %4942 = vmatpush3.msra.mxu1 %v1066_v8  ;;  %v796_v32 = vsub.f32 %v764_v59, %v788_v30  ;;  %817 = vadd.xlane.f32.xlu0 %v816_v31 }
 0x342   :  { %5283 = vpow2.f32 %v807_v28  ;;  %4943 = vmatprep.mubr.msk.f32.mxu1 %vm5378_vm1, %v5375_v10  ;;  %4951 = vmatprep.subr.mxu1 %v5375_v10 }
 0x343   :  { %v5276_v33 = vpop.eup %5275  ;;  %v811_v34 = vmul.f32 1.442695, %v796_v32 }
 0x344   :  { %4939 = vmatmul.mubr.msk.f32.vlgmr.msra.gmra.mrb[12].mxu0 %vm150_vm2, %v5276_v33  ;;  %v819_v35 = vsel %vm150_vm2, %v5276_v33, 0.0  ;;  %v1294_v38 = vpop.permute.xlu0 %1293 }
 0x345   :  { %5285 = vpow2.f32 %v811_v34  ;;  %4947 = vmatpush3.msra.mxu0 %v5509_v29  ;;  %820 = vadd.xlane.f32.xlu0 %v819_v35 }
 0x346   :  { %4948 = vmatprep.mubr.msk.f32.mxu0 %vm5378_vm1, %v5375_v10  ;;  %4956 = vmatprep.subr.mxu0 %v5375_v10 }
 0x347   :  { %v5278_v36 = vpop.eup %5277 }
 0x348   :  { %v5280_v37 = vpop.eup %5279  ;;  %4949 = vmatmul.mubr.msk.f32.vlgmr.msra.gmra.mrb[14].mxu0 %vm150_vm2, %v5278_v36  ;;  %v825_v42 = vsel %vm150_vm2, %v5278_v36, 0.0 }
 0x349   :  { %4944 = vmatmul.mubr.msk.f32.vlgmr.msra.gmra.mrb[10].mxu1 %vm150_vm2, %v5280_v37  ;;  %4957 = vmatpush3.msra.mxu0 %v1294_v38  ;;  %v822_v39 = vsel %vm150_vm2, %v5280_v37, 0.0 }
 0x34a   :  { %4952 = vmatpush3.msra.mxu1 %v1218_v2  ;;  %823 = vadd.xlane.f32.xlu0 %v822_v39  ;;  %v4650_v39 = vld [vmem:[%s5969_s1 + $0x21] ss:$0 sm:$0xff] }
 0x34b   :  { %v5282_v40 = vpop.eup %5281  ;;  %4953 = vmatprep.mubr.msk.f32.mxu1 %vm5378_vm1, %v5375_v10  ;;  %4958 = vmatprep.mubr.msk.f32.mxu0 %vm5378_vm1, %v5375_v10 }
 0x34c   :  { %v5284_v29 = vpop.eup %5283  ;;  %4961 = vmatprep.subr.mxu1 %v5375_v10  ;;  %4959 = vmatmul.mubr.msk.f32.vlgmr.msra.gmra.mrb[16].mxu0 %vm150_vm2, %v5282_v40  ;;  %v831_v47 = vsel %vm150_vm2, %v5282_v40, 0.0 }
 0x34d   :  { %4954 = vmatmul.mubr.msk.f32.vlgmr.msra.gmra.mrb[12].mxu1 %vm150_vm2, %v5284_v29  ;;  %v828_v43 = vsel %vm150_vm2, %v5284_v29, 0.0  ;;  %4966 = vmatprep.subr.mxu0 %v5375_v10 }
 0x34e   :  { %4962 = vmatpush3.msra.mxu1 %v1370_v41  ;;  %826 = vadd.xlane.f32.xlu0 %v825_v42 }
 0x34f   :  { %v5286_v44 = vpop.eup %5285  ;;  %829 = vadd.xlane.f32.xlu1 %v828_v43  ;;  %4963 = vmatprep.mubr.msk.f32.mxu1 %vm5378_vm1, %v5375_v10 }
 0x350   :  { %v834_v46 = vsel %vm150_vm2, %v5286_v44, 0.0  ;;  %4971 = vmatprep.subr.mxu1 %v5375_v10  ;;  %4968 = vmatprep.mubr.msk.f32.mxu0 %vm5378_vm1, %v5375_v10 }
 0x351   :  { %4964 = vmatmul.mubr.msk.f32.vlgmr.msra.gmra.mrb[14].mxu1 %vm150_vm2, %v5286_v44  ;;  %4967 = vmatpush3.msra.mxu0 %v37_v48 }
 0x352   :  { %835 = vadd.xlane.f32.xlu0 %v834_v46  ;;  %4972 = vmatpush3.msra.mxu1 %v5563_v45 }
 0x353   :  { %832 = vadd.xlane.f32.xlu1 %v831_v47  ;;  %4973 = vmatprep.mubr.msk.f32.mxu1 %vm5378_vm1, %v5375_v10 }
 0x354   :  { %4981 = vmatprep.subr.mxu1 %v5375_v10  ;;  %4976 = vmatprep.subr.mxu0 %v5375_v10 }
 0x371   :  { %v815_v49 = vpop.xlane.xlu1 %814 }
 0x372   :  { %5287 = vrcp.f32 %v815_v49 }
 0x37c   :  { %v5288_v50 = vpop.eup %5287 }
 0x3ad   :  { %v909_v51 = vpop.f32.mrb[10].mxu0 }
 0x3ae   :  { %v1453_v52 = vmul.f32 %v5288_v50, %v909_v51  ;;  %v4930_v53 = vpop.f32.mrb[11].mxu0 }
 0x3b0   :  { %4974 = vmatmul.mubr.msk.f32.vlgmr.msra.gmra.mrb[16].mxu1 %vm150_vm2, %v1453_v52 }
 0x3b1   :  { %4982 = vmatpush3.msra.mxu1 %v5582_v54  ;;  %4983 = vmatprep.mubr.msk.f32.mxu1 %vm5378_vm1, %v5375_v10 }
 0x3b2   :  { %4991 = vmatprep.subr.mxu1 %v5375_v10 }
 0x3ce   :  { %v818_v55 = vpop.xlane.xlu0 %817 }
 0x3cf   :  { %5289 = vrcp.f32 %v818_v55 }
 0x3d2   :  { %v821_v56 = vpop.xlane.xlu0 %820 }
 0x3d3   :  { %5291 = vrcp.f32 %v821_v56 }
 0x3d7   :  { %v824_v57 = vpop.xlane.xlu0 %823 }
 0x3d8   :  { %5293 = vrcp.f32 %v824_v57 }
 0x3d9   :  { %v5290_v60 = vpop.eup %5289 }
 0x3db   :  { %v827_v58 = vpop.xlane.xlu0 %826 }
 0x3dc   :  { %v830_v59 = vpop.xlane.xlu1 %829  ;;  %5295 = vrcp.f32 %v827_v58 }
 0x3dd   :  { %5297 = vrcp.f32 %v830_v59  ;;  %v5292_v2 = vpop.eup %5291 }
 0x3df   :  { %v836_v1 = vpop.xlane.xlu0 %835 }
 0x3e0   :  { %v833_v3 = vpop.xlane.xlu1 %832  ;;  %5299 = vrcp.f32 %v836_v1 }
 0x3e1   :  { %5301 = vrcp.f32 %v833_v3 }
 0x3e2   :  { %v5294_v11 = vpop.eup %5293 }
 0x3e6   :  { %v5296_v16 = vpop.eup %5295 }
 0x3e7   :  { %v5298_v18 = vpop.eup %5297 }
 0x3ea   :  { %v5300_v24 = vpop.eup %5299 }
 0x3eb   :  { %v5302_v25 = vpop.eup %5301 }
 0x413   :  { %v985_v61 = vpop.f32.mrb[8].mxu1 }
 0x414   :  { %v1454_v62 = vmul.f32 %v5290_v60, %v985_v61  ;;  %v4935_v63 = vpop.f32.mrb[9].mxu1 }
 0x416   :  { %4969 = vmatmul.mubr.msk.f32.vlgmr.msra.gmra.mrb[18].mxu0 %vm150_vm2, %v1454_v62 }
 0x417   :  { %v1061_v4 = vpop.f32.mrb[12].mxu0  ;;  %4977 = vmatpush3.msra.mxu0 %v38_v0  ;;  %4978 = vmatprep.mubr.msk.f32.mxu0 %vm5378_vm1, %v5375_v10 }
 0x418   :  { %v1455_v6 = vmul.f32 %v5292_v2, %v1061_v4  ;;  %v4940_v8 = vpop.f32.mrb[13].mxu0  ;;  %4986 = vmatprep.subr.mxu0 %v5375_v10  ;;  %v33_v4 = vld [vmem:[%s5970_s2 + $0x8] sm:$0xff] }
 0x419   :  { %v34_v8 = vld [vmem:[%s5970_s2 + $0x10] sm:$0xff] }
 0x41a   :  { %4979 = vmatmul.mubr.msk.f32.vlgmr.msra.gmra.mrb[20].mxu0 %vm150_vm2, %v1455_v6 }
 0x41b   :  { %v1213_v9 = vpop.f32.mrb[14].mxu0  ;;  %4987 = vmatpush3.msra.mxu0 %v37_v48  ;;  %4988 = vmatprep.mubr.msk.f32.mxu0 %vm5378_vm1, %v5375_v10 }
 0x41c   :  { %v1137_v12 = vpop.f32.mrb[10].mxu1  ;;  %v4950_v13 = vpop.f32.mrb[15].mxu0  ;;  %4996 = vmatprep.subr.mxu0 %v5375_v10  ;;  %v1457_v21 = vmul.f32 %v5296_v16, %v1213_v9  ;;  %v35_v9 = vld [vmem:[%s5970_s2 + $0x18] sm:$0xff] }
 0x41d   :  { %v1456_v14 = vmul.f32 %v5294_v11, %v1137_v12  ;;  %v4945_v15 = vpop.f32.mrb[11].mxu1  ;;  %v5209_v11 = vpack.c.bf16 %v35_v9, %v34_v8  ;;  %v40_v12 = vld [vmem:[%s5971_s3 + $0x20] sm:$0xff]  ;;  %v41_v13 = vld [vmem:[%s5971_s3 + $0x28] sm:$0xff]  ;;  %v43_v16 = vld [vmem:[%s5971_s3 + $0x38] sm:$0xff] }
 0x41e   :  { %v5213_v15 = vpack.c.bf16 %v41_v13, %v40_v12 }
 0x41f   :  { %4984 = vmatmul.mubr.msk.f32.vlgmr.msra.gmra.mrb[18].mxu1 %vm150_vm2, %v1456_v14  ;;  %v1365_v17 = vpop.f32.mrb[16].mxu0  ;;  %v42_v14 = vld [vmem:[%s5971_s3 + $0x30] sm:$0xff] }
 0x420   :  { %v1289_v19 = vpop.f32.mrb[12].mxu1  ;;  %v4960_v20 = vpop.f32.mrb[17].mxu0  ;;  %4992 = vmatpush3.msra.mxu1 %v5563_v45  ;;  %4993 = vmatprep.mubr.msk.f32.mxu1 %vm5378_vm1, %v5375_v10  ;;  %v1459_v27 = vmul.f32 %v5302_v25, %v1365_v17  ;;  %v5217_v17 = vpack.c.bf16 %v43_v16, %v42_v14  ;;  %v4659_v16 = vld [vmem:[%s5969_s1 + $0x26] ss:$0 sm:$0xff] }
 0x421   :  { %v1458_v22 = vmul.f32 %v5298_v18, %v1289_v19  ;;  %v4955_v23 = vpop.f32.mrb[13].mxu1  ;;  %5001 = vmatprep.subr.mxu1 %v5375_v10  ;;  %v44_v18 = vld [vmem:[%s5971_s3 + $0x40] sm:$0xff]  ;;  %v45_v19 = vld [vmem:[%s5971_s3 + $0x48] sm:$0xff] }
 0x422   :  { %v5221_v20 = vpack.c.bf16 %v45_v19, %v44_v18 }
 0x423   :  { %4989 = vmatmul.mubr.msk.f32.vlgmr.msra.gmra.mrb[22].mxu0 %vm150_vm2, %v1458_v22  ;;  %4994 = vmatmul.mubr.msk.f32.vlgmr.msra.gmra.mrb[20].mxu1 %vm150_vm2, %v1457_v21 }
 0x424   :  { %v1441_v26 = vpop.f32.mrb[14].mxu1  ;;  %4997 = vmatpush3.msra.mxu0 %v38_v0  ;;  %4998 = vmatprep.mubr.msk.f32.mxu0 %vm5378_vm1, %v5375_v10 }
 0x425   :  { %v1460_v28 = vmul.f32 %v5300_v24, %v1441_v26  ;;  %v4965_v30 = vpop.f32.mrb[15].mxu1  ;;  %5002 = vmatpush3.msra.mxu1 %v5582_v54  ;;  %5003 = vmatprep.mubr.msk.f32.mxu1 %vm5378_vm1, %v5375_v10 }
 0x426   :  { %5214 = vmatprep.subr.bf16.mxu1 %v5213_v15 }
 0x427   :  { %4999 = vmatmul.mubr.msk.f32.vlgmr.msra.gmra.mrb[24].mxu0 %vm150_vm2, %v1459_v27  ;;  %5004 = vmatmul.mubr.msk.f32.vlgmr.msra.gmra.mrb[22].mxu1 %vm150_vm2, %v1460_v28  ;;  %v4651_v28 = vld [vmem:[%s5969_s1 + $0x24] ss:$0 sm:$0xff] }
 0x428   :  { %5216 = vmatpush3.bf16.msra.mxu1 %v5213_v15 }
 0x429   :  { %5218 = vmatprep.subr.bf16.mxu1 %v5217_v17 }
 0x42c   :  { %5220 = vmatpush3.bf16.msra.mxu1 %v5217_v17 }
 0x42d   :  { %5222 = vmatprep.subr.bf16.mxu1 %v5221_v20 }
 0x430   :  { %5224 = vmatpush3.bf16.msra.mxu1 %v5221_v20  ;;  %v4660_v20 = vld [vmem:[%s5969_s1 + $0x27] ss:$0 sm:$0xff] }
 0x483   :  { %v1603_v31 = vpop.f32.mrb[16].mxu1 }
 0x484   :  { %v4975_v32 = vpop.f32.mrb[17].mxu1 }
 0x4e9   :  { %v1530_v33 = vpop.f32.mrb[18].mxu0 }
 0x4ea   :  { %v1604_v34 = vadd.f32 %v1603_v31, %v1530_v33  ;;  %v4970_v35 = vpop.f32.mrb[19].mxu0  ;;  %v4652_v31 = vld [vmem:[%s5969_s1 + $0x25] ss:$0 sm:$0xff] }
 0x4ed   :  { %v1676_v36 = vpop.f32.mrb[20].mxu0 }
 0x4ee   :  { %v1680_v37 = vadd.f32 %v1676_v36, %v1604_v34  ;;  %v4980_v38 = vpop.f32.mrb[21].mxu0 }
 0x4ef   :  { %v46_v38 = vld [vmem:[%s5971_s3 + $0x50] sm:$0xff] }
 0x4f2   :  { %v1750_v40 = vpop.f32.mrb[18].mxu1 }
 0x4f3   :  { %v1754_v29 = vadd.f32 %v1750_v40, %v1680_v37  ;;  %v4985_v41 = vpop.f32.mrb[19].mxu1 }
 0x4f5   :  { %v2053_v42 = vadd.f32 %v4650_v39, %v1754_v29  ;;  %v4653_v29 = vld [vmem:[%s5969_s1 + $0x22] ss:$0 sm:$0xff] }
 0x4f6   :  { %v1824_v43 = vpop.f32.mrb[22].mxu0  ;;  %v1897_v44 = vpop.f32.mrb[20].mxu1 }
 0x4f7   :  { %v1898_v45 = vadd.f32 %v1897_v44, %v1824_v43  ;;  %v4990_v46 = vpop.f32.mrb[23].mxu0  ;;  %v4995_v47 = vpop.f32.mrb[21].mxu1  ;;  %v2055_v48 = vadd.f32 %v2053_v42, %v5425_v5 }
 0x4f8   :  { %v4656_v47 = vld [vmem:[%s5969_s1 + $0x23] ss:$0 sm:$0xff] }
 0x4f9   :  { %v2057_v49 = vsel %vm52_vm0, %v2055_v48, 0.0 }
 0x4fa   :  { %v1970_v50 = vpop.f32.mrb[24].mxu0  ;;  %2058 = vadd.xlane.f32.xlu1 %v2057_v49  ;;  %v2044_v51 = vpop.f32.mrb[22].mxu1 }
 0x4fb   :  { %v1974_v52 = vadd.f32 %v1970_v50, %v1898_v45  ;;  %v5000_v53 = vpop.f32.mrb[25].mxu0  ;;  %v5005_v54 = vpop.f32.mrb[23].mxu1 }
 0x4fd   :  { %v2048_v55 = vadd.f32 %v2044_v51, %v1974_v52 }
 0x4ff   :  { %v2054_v56 = vadd.f32 %v4650_v39, %v2048_v55  ;;  %v47_v39 = vld [vmem:[%s5971_s3 + $0x58] sm:$0xff] }
 0x500   :  { %v5225_v40 = vpack.c.bf16 %v47_v39, %v46_v38 }
 0x501   :  { %v2056_v57 = vadd.f32 %v2054_v56, %v5432_v7  ;;  %v32_v7 = vld [vmem:[%s5970_s2] sm:$0xff] }
 0x502   :  { %v5205_v6 = vpack.c.bf16 %v33_v4, %v32_v7  ;;  %5226 = vmatprep.subr.bf16.mxu1 %v5225_v40  ;;  %v4663_v7 = vld [vmem:[%s5969_s1 + $0x38] sm:$0xff]  ;;  %v4664_v4 = vld [vmem:[%s5969_s1 + $0x40] sm:$0xff] }
 0x503   :  { %v2060_v58 = vsel %vm52_vm0, %v2056_v57, 0.0  ;;  %5228 = vmatpush3.bf16.msra.mxu1 %v5225_v40 }
 0x504   :  { %2061 = vadd.xlane.f32.xlu0 %v2060_v58  ;;  %5206 = vmatprep.subr.bf16.mxu0 %v5205_v6 }
 0x505   :  { %5208 = vmatpush3.bf16.msra.mxu0 %v5205_v6  ;;  %5052 = vmatprep.subr.mxu1 %v5375_v10  ;;  %v5233_v6 = vpack.c.bf16 %v4664_v4, %v4663_v7 }
 0x506   :  { %5210 = vmatprep.subr.bf16.mxu0 %v5209_v11 }
 0x509   :  { %5212 = vmatpush3.bf16.msra.mxu0 %v5209_v11 }
 0x587   :  { %v2059_v59 = vpop.xlane.xlu1 %2058 }
 0x588   :  { %v2064_v60 = vmul.f32 0.03125, %v2059_v59 }
 0x58a   :  { %v2066_v61 = vsub.f32 %v2055_v48, %v2064_v60 }
 0x58c   :  { %v2068_v62 = vmul.f32 %v2066_v61, %v2066_v61 }
 0x58e   :  { %v2070_v5 = vsel %vm52_vm0, %v2068_v62, 0.0 }
 0x58f   :  { %2071 = vadd.xlane.f32.xlu1 %v2070_v5 }
 0x591   :  { %v2062_v63 = vpop.xlane.xlu0 %2061 }
 0x592   :  { %v2065_v0 = vmul.f32 0.03125, %v2062_v63 }
 0x594   :  { %v2067_v1 = vsub.f32 %v2056_v57, %v2065_v0 }
 0x596   :  { %v2069_v2 = vmul.f32 %v2067_v1, %v2067_v1 }
 0x598   :  { %v2073_v3 = vsel %vm52_vm0, %v2069_v2, 0.0  ;;  %v4662_v2 = vld [vmem:[%s5969_s1 + $0x30] sm:$0xff] }
 0x599   :  { %2074 = vadd.xlane.f32.xlu0 %v2073_v3 }
 0x61c   :  { %v2072_v21 = vpop.xlane.xlu1 %2071 }
 0x61d   :  { %v2076_v22 = vmul.f32 0.03125, %v2072_v21 }
 0x61f   :  { %v2078_v23 = vadd.f32 1e-05, %v2076_v22 }
 0x621   :  { %5303 = vrsqrt.f32 %v2078_v23 }
 0x626   :  { %v2075_v24 = vpop.xlane.xlu0 %2074 }
 0x627   :  { %v2077_v25 = vmul.f32 0.03125, %v2075_v24 }
 0x629   :  { %v2079_v26 = vadd.f32 1e-05, %v2077_v25  ;;  %v4689_v25 = vld [vmem:[%s5969_s1 + $0x48] ss:$0 sm:$0xff] }
 0x62b   :  { %v5304_v27 = vpop.eup %5303  ;;  %5305 = vrsqrt.f32 %v2079_v26 }
 0x62c   :  { %v2082_v30 = vmul.f32 %v5304_v27, %v2066_v61 }
 0x62e   :  { %v2088_v32 = vmul.f32 %v4651_v28, %v2082_v30 }
 0x630   :  { %v2094_v33 = vadd.f32 %v4652_v31, %v2088_v32 }
 0x632   :  { %5014 = vmatprep.mubr.msk.f32.mxu0 %vm52_vm0, %v2094_v33 }
 0x635   :  { %v5306_v34 = vpop.eup %5305 }
 0x636   :  { %v2083_v35 = vmul.f32 %v5306_v34, %v2067_v1  ;;  %v4661_v1 = vld [vmem:[%s5969_s1 + $0x28] sm:$0xff] }
 0x637   :  { %v5229_v3 = vpack.c.bf16 %v4662_v2, %v4661_v1 }
 0x638   :  { %v2089_v36 = vmul.f32 %v4651_v28, %v2083_v35 }
 0x639   :  { %5230 = vmatprep.subr.bf16.mxu0 %v5229_v3 }
 0x63a   :  { %v2095_v37 = vadd.f32 %v4652_v31, %v2089_v36 }
 0x63c   :  { %5015 = vmatmul.mubr.msk.f32.vlgmr.msra.gmra.mrb[26].mxu0 %vm52_vm0, %v2095_v37 }
 0x63d   :  { %5232 = vmatpush3.bf16.msra.mxu0 %v5229_v3 }
 0x63e   :  { %5234 = vmatprep.subr.bf16.mxu0 %v5233_v6 }
 0x641   :  { %5236 = vmatpush3.bf16.msra.mxu0 %v5233_v6 }
 0x642   :  { %5047 = vmatprep.subr.mxu0 %v5375_v10 }
 0x70f   :  { %v5016_v41 = vpop.f32.mrb[26].mxu0 }
 0x710   :  { %v2178_v42 = vadd.f32 %v5016_v41, %v4653_v29  ;;  %v2172_v43 = vpop.f32.mrb[27].mxu0 }
 0x711   :  { %v2173_v44 = vadd.f32 %v4653_v29, %v2172_v43 }
 0x712   :  { %v2182_v46 = vmax.f32 %v2178_v42, 0.0 }
 0x713   :  { %v2181_v45 = vmax.f32 %v2173_v44, 0.0 }
 0x715   :  { %5033 = vmatprep.mubr.msk.f32.mxu1 %vm2187_vm3, %v2181_v45 }
 0x716   :  { %5034 = vmatmul.mubr.msk.f32.vlgmr.msra.gmra.mrb[24].mxu1 %vm2187_vm3, %v2182_v46 }
 0x717   :  { %5054 = vmatprep.mubr.msk.f32.mxu1 %vm5378_vm1, %v5375_v10 }
 0x7e9   :  { %v5035_v48 = vpop.f32.mrb[24].mxu1 }
 0x7ea   :  { %v2266_v49 = vadd.f32 %v5035_v48, %v4656_v47  ;;  %v2260_v50 = vpop.f32.mrb[25].mxu1 }
 0x7eb   :  { %v2261_v51 = vadd.f32 %v4656_v47, %v2260_v50 }
 0x7ec   :  { %v2270_v52 = vadd.f32 %v2266_v49, %v2095_v37 }
 0x7ed   :  { %v2269_v53 = vadd.f32 %v2261_v51, %v2094_v33 }
 0x7ee   :  { %v2274_v54 = vsel %vm52_vm0, %v2270_v52, 0.0 }
 0x7ef   :  { %2275 = vadd.xlane.f32.xlu0 %v2274_v54  ;;  %v2271_v55 = vsel %vm52_vm0, %v2269_v53, 0.0 }
 0x7f0   :  { %2272 = vadd.xlane.f32.xlu1 %v2271_v55 }
 0x87c   :  { %v2276_v56 = vpop.xlane.xlu0 %2275 }
 0x87d   :  { %v2278_v57 = vmul.f32 0.03125, %v2276_v56  ;;  %v2273_v58 = vpop.xlane.xlu1 %2272 }
 0x87e   :  { %v2277_v59 = vmul.f32 0.03125, %v2273_v58 }
 0x87f   :  { %v2280_v60 = vsub.f32 %v2270_v52, %v2278_v57 }
 0x880   :  { %v2279_v61 = vsub.f32 %v2269_v53, %v2277_v59 }
 0x881   :  { %v2282_v62 = vmul.f32 %v2280_v60, %v2280_v60 }
 0x882   :  { %v2281_v5 = vmul.f32 %v2279_v61, %v2279_v61 }
 0x883   :  { %v2286_v63 = vsel %vm52_vm0, %v2282_v62, 0.0 }
 0x884   :  { %2287 = vadd.xlane.f32.xlu0 %v2286_v63  ;;  %v2283_v0 = vsel %vm52_vm0, %v2281_v5, 0.0 }
 0x885   :  { %2284 = vadd.xlane.f32.xlu1 %v2283_v0 }
 0x911   :  { %v2288_v8 = vpop.xlane.xlu0 %2287 }
 0x912   :  { %v2290_v9 = vmul.f32 0.03125, %v2288_v8  ;;  %v2285_v11 = vpop.xlane.xlu1 %2284 }
 0x913   :  { %v2289_v12 = vmul.f32 0.03125, %v2285_v11 }
 0x914   :  { %v2292_v13 = vadd.f32 1e-05, %v2290_v9 }
 0x915   :  { %v2291_v14 = vadd.f32 1e-05, %v2289_v12 }
 0x916   :  { %5307 = vrsqrt.f32 %v2292_v13 }
 0x917   :  { %5309 = vrsqrt.f32 %v2291_v14 }
 0x920   :  { %v5308_v15 = vpop.eup %5307 }
 0x921   :  { %v5310_v17 = vpop.eup %5309  ;;  %v2296_v18 = vmul.f32 %v5308_v15, %v2280_v60 }
 0x922   :  { %v2295_v19 = vmul.f32 %v5310_v17, %v2279_v61 }
 0x923   :  { %v2302_v21 = vmul.f32 %v4659_v16, %v2296_v18 }
 0x924   :  { %v2301_v22 = vmul.f32 %v4659_v16, %v2295_v19 }
 0x925   :  { %v5703_v24 = vadd.f32 %v4660_v20, %v2302_v21 }
 0x926   :  { %v5701_v23 = vadd.f32 %v4660_v20, %v2301_v22 }
 0x928   :  { %5044 = vmatprep.mubr.msk.f32.mxu0 %vm52_vm0, %v5701_v23 }
 0x929   :  { %5045 = vmatmul.mubr.msk.f32.vlgmr.msra.gmra.mrb[28].mxu0 %vm52_vm0, %v5703_v24 }
 0x92a   :  { %5049 = vmatprep.mubr.msk.f32.mxu0 %vm5378_vm1, %v5375_v10 }
 0x9fc   :  { %v5046_v26 = vpop.f32.mrb[28].mxu0 }
 0x9fd   :  { %v2416_v27 = vpop.f32.mrb[29].mxu0  ;;  %v2422_v30 = vadd.f32 %v5046_v26, %v4689_v25 }
 0x9fe   :  { %v2417_v28 = vadd.f32 %v4689_v25, %v2416_v27 }
 0xa00   :  { %2428 = vrot.lane.b32.xlu0 %v2417_v28, %s5379_s30  ;;  %2426 = vrot.lane.b32.xlu1 %v2417_v28, %s5377_s0 }
 0xa04   :  { %2435 = vrot.lane.b32.xlu0 %v2422_v30, %s5379_s30  ;;  %2430 = vrot.lane.b32.xlu1 %v2417_v28, %s5376_s29 }
 0xa08   :  { %2439 = vrot.lane.b32.xlu0 %v2417_v28, %s5380_s5  ;;  %2433 = vrot.lane.b32.xlu1 %v2422_v30, %s5377_s0 }
 0xa0c   :  { %2437 = vrot.lane.b32.xlu1 %v2422_v30, %s5376_s29 }
 0xa72   :  { %v2429_v31 = vpop.permute.xlu0 %2428  ;;  %v2427_v32 = vpop.permute.xlu1 %2426 }
 0xa73   :  { %2591 = vrot.lane.b32.xlu0 %v2429_v31, %s5380_s5  ;;  %2515 = vrot.lane.b32.xlu1 %v2427_v32, %s5380_s5 }
 0xa76   :  { %v5723_v33 = vpop.permute.xlu0 %2435  ;;  %v2431_v34 = vpop.permute.xlu1 %2430 }
 0xa77   :  { %2743 = vrot.lane.b32.xlu0 %v2422_v30, %s5380_s5  ;;  %2667 = vrot.lane.b32.xlu1 %v2431_v34, %s5380_s5 }
 0xa7a   :  { %v2440_v35 = vpop.permute.xlu0 %2439  ;;  %v2434_v36 = vpop.permute.xlu1 %2433 }
 0xa7b   :  { %2895 = vrot.lane.b32.xlu0 %v5723_v33, %s5380_s5  ;;  %5048 = vmatpush3.xpose.msk.msra.mxu0 %vm150_vm2, %v2440_v35 }
 0xa7c   :  { %2819 = vrot.lane.b32.xlu1 %v2434_v36, %s5380_s5  ;;  %5057 = vmatprep.subr.mxu0 %v5375_v10 }
 0xa7e   :  { %5050 = vmatmul.mubr.msk.f32.vlgmr.msra.gmra.mrb[30].mxu0 %vm150_vm2, %v2417_v28  ;;  %v5733_v37 = vpop.permute.xlu1 %2437 }
 0xa7f   :  { %3431 = vrot.lane.b32.xlu0 %v2422_v30, %s5381_s6  ;;  %5059 = vmatprep.mubr.msk.f32.mxu0 %vm5378_vm1, %v5375_v10 }
 0xa80   :  { %2971 = vrot.lane.b32.xlu1 %v5733_v37, %s5380_s5 }
 0xa83   :  { %3203 = vrot.lane.b32.xlu0 %v2427_v32, %s5381_s6 }
 0xa84   :  { %3127 = vrot.lane.b32.xlu1 %v2417_v28, %s5381_s6 }
 0xa88   :  { %3507 = vrot.lane.b32.xlu1 %v2434_v36, %s5381_s6 }
 0xa8c   :  { %3279 = vrot.lane.b32.xlu1 %v2429_v31, %s5381_s6 }
 0xa90   :  { %3355 = vrot.lane.b32.xlu1 %v2431_v34, %s5381_s6 }
 0xae5   :  { %v2592_v38 = vpop.permute.xlu0 %2591  ;;  %v2516_v39 = vpop.permute.xlu1 %2515 }
 0xae6   :  { %5053 = vmatpush3.xpose.msk.msra.mxu1 %vm150_vm2, %v2516_v39  ;;  %5058 = vmatpush3.xpose.msk.msra.mxu0 %vm150_vm2, %v2592_v38 }
 0xae7   :  { %5067 = vmatprep.subr.mxu0 %v5375_v10  ;;  %5062 = vmatprep.subr.mxu1 %v5375_v10 }
 0xae9   :  { %5060 = vmatmul.mubr.msk.f32.vlgmr.msra.gmra.mrb[32].mxu0 %vm150_vm2, %v2429_v31  ;;  %v2744_v40 = vpop.permute.xlu0 %2743  ;;  %5055 = vmatmul.mubr.msk.f32.vlgmr.msra.gmra.mrb[26].mxu1 %vm150_vm2, %v2427_v32  ;;  %v2668_v29 = vpop.permute.xlu1 %2667 }
 0xaea   :  { %5063 = vmatpush3.xpose.msk.msra.mxu1 %vm150_vm2, %v2668_v29  ;;  %5068 = vmatpush3.xpose.msk.msra.mxu0 %vm150_vm2, %v2744_v40 }
 0xaeb   :  { %5064 = vmatprep.mubr.msk.f32.mxu1 %vm5378_vm1, %v5375_v10  ;;  %5069 = vmatprep.mubr.msk.f32.mxu0 %vm5378_vm1, %v5375_v10 }
 0xaec   :  { %5077 = vmatprep.subr.mxu0 %v5375_v10  ;;  %5072 = vmatprep.subr.mxu1 %v5375_v10 }
 0xaed   :  { %5070 = vmatmul.mubr.msk.f32.vlgmr.msra.gmra.mrb[34].mxu0 %vm150_vm2, %v2422_v30  ;;  %v2896_v41 = vpop.permute.xlu0 %2895  ;;  %5065 = vmatmul.mubr.msk.f32.vlgmr.msra.gmra.mrb[28].mxu1 %vm150_vm2, %v2431_v34 }
 0xaee   :  { %v2820_v42 = vpop.permute.xlu1 %2819  ;;  %5078 = vmatpush3.xpose.msk.msra.mxu0 %vm150_vm2, %v2896_v41  ;;  %5074 = vmatprep.mubr.msk.f32.mxu1 %vm5378_vm1, %v5375_v10 }
 0xaef   :  { %5073 = vmatpush3.xpose.msk.msra.mxu1 %vm150_vm2, %v2820_v42  ;;  %5079 = vmatprep.mubr.msk.f32.mxu0 %vm5378_vm1, %v5375_v10 }
 0xaf0   :  { %5082 = vmatprep.subr.mxu1 %v5375_v10  ;;  %5087 = vmatprep.subr.mxu0 %v5375_v10 }
 0xaf1   :  { %5080 = vmatmul.mubr.msk.f32.vlgmr.msra.gmra.mrb[36].mxu0 %vm150_vm2, %v5723_v33  ;;  %v5771_v43 = vpop.permute.xlu0 %3431 }
 0xaf2   :  { %5075 = vmatmul.mubr.msk.f32.vlgmr.msra.gmra.mrb[30].mxu1 %vm150_vm2, %v2434_v36  ;;  %v2972_v44 = vpop.permute.xlu1 %2971  ;;  %5089 = vmatprep.mubr.msk.f32.mxu0 %vm5378_vm1, %v5375_v10 }
 0xaf3   :  { %5083 = vmatpush3.xpose.msk.msra.mxu1 %vm150_vm2, %v2972_v44  ;;  %5084 = vmatprep.mubr.msk.f32.mxu1 %vm5378_vm1, %v5375_v10 }
 0xaf4   :  { %5092 = vmatprep.subr.mxu1 %v5375_v10 }
 0xaf5   :  { %v3204_v45 = vpop.permute.xlu0 %3203 }
 0xaf6   :  { %5085 = vmatmul.mubr.msk.f32.vlgmr.msra.gmra.mrb[32].mxu1 %vm150_vm2, %v5733_v37  ;;  %v3128_v46 = vpop.permute.xlu1 %3127 }
 0xaf7   :  { %5088 = vmatpush3.msra.mxu0 %v3128_v46  ;;  %5093 = vmatpush3.msra.mxu1 %v3204_v45 }
 0xaf8   :  { %5097 = vmatprep.subr.mxu0 %v5375_v10  ;;  %5094 = vmatprep.mubr.msk.f32.mxu1 %vm5378_vm1, %v5375_v10 }
 0xaf9   :  { %5102 = vmatprep.subr.mxu1 %v5375_v10 }
 0xafa   :  { %v3508_v19 = vpop.permute.xlu1 %3507 }
 0xafe   :  { %v3280_v21 = vpop.permute.xlu1 %3279 }
 0xb02   :  { %v3356_v25 = vpop.permute.xlu1 %3355 }
 0xb51   :  { %v2511_v47 = vpop.f32.mrb[30].mxu0 }
 0xb52   :  { %v3047_v48 = vmul.f32 0.35355338, %v2511_v47  ;;  %v5051_v49 = vpop.f32.mrb[31].mxu0 }
 0xb54   :  { %v3055_v50 = vsel %vm150_vm2, %v3047_v48, -inf }
 0xb55   :  { %3056 = vmax.xlane.f32.xlu0 %v3055_v50 }
 0xbbc   :  { %v2587_v51 = vpop.f32.mrb[26].mxu1  ;;  %v2663_v52 = vpop.f32.mrb[32].mxu0 }
 0xbbd   :  { %v3048_v53 = vmul.f32 0.35355338, %v2587_v51  ;;  %v3049_v54 = vmul.f32 0.35355338, %v2663_v52  ;;  %v5056_v55 = vpop.f32.mrb[27].mxu1  ;;  %v5061_v56 = vpop.f32.mrb[33].mxu0 }
 0xbbf   :  { %v3061_v57 = vsel %vm150_vm2, %v3049_v54, -inf  ;;  %v3058_v58 = vsel %vm150_vm2, %v3048_v53, -inf }
 0xbc0   :  { %v2815_v59 = vpop.f32.mrb[34].mxu0  ;;  %3062 = vmax.xlane.f32.xlu0 %v3061_v57  ;;  %3059 = vmax.xlane.f32.xlu1 %v3058_v58  ;;  %v2739_v60 = vpop.f32.mrb[28].mxu1 }
 0xbc1   :  { %v3051_v61 = vmul.f32 0.35355338, %v2815_v59  ;;  %v3050_v62 = vmul.f32 0.35355338, %v2739_v60  ;;  %v5066_v5 = vpop.f32.mrb[29].mxu1  ;;  %v5071_v63 = vpop.f32.mrb[35].mxu0 }
 0xbc2   :  { %v5830_v59 = vld [vmem:[%s5971_s3 + $0x60] sm:$0xff]  ;;  %v4678_v63 = vld [vmem:[%s5971_s3 + $0x68] sm:$0xff] }
 0xbc3   :  { %v3067_v0 = vsel %vm150_vm2, %v3051_v61, -inf  ;;  %v3064_v1 = vsel %vm150_vm2, %v3050_v62, -inf }
 0xbc4   :  { %v2967_v2 = vpop.f32.mrb[36].mxu0  ;;  %3068 = vmax.xlane.f32.xlu1 %v3067_v0  ;;  %3065 = vmax.xlane.f32.xlu0 %v3064_v1 }
 0xbc5   :  { %v3053_v3 = vmul.f32 0.35355338, %v2967_v2  ;;  %v2891_v7 = vpop.f32.mrb[30].mxu1  ;;  %v5081_v4 = vpop.f32.mrb[37].mxu0 }
 0xbc6   :  { %v3052_v6 = vmul.f32 0.35355338, %v2891_v7  ;;  %v5076_v8 = vpop.f32.mrb[31].mxu1  ;;  %v5851_v4 = vld [vmem:[%s5971_s3 + $0x78] sm:$0xff] }
 0xbc7   :  { %v3073_v9 = vsel %vm150_vm2, %v3053_v3, -inf }
 0xbc8   :  { %3074 = vmax.xlane.f32.xlu1 %v3073_v9  ;;  %v3070_v11 = vsel %vm150_vm2, %v3052_v6, -inf }
 0xbc9   :  { %3071 = vmax.xlane.f32.xlu0 %v3070_v11  ;;  %v3043_v12 = vpop.f32.mrb[32].mxu1 }
 0xbca   :  { %v3054_v13 = vmul.f32 0.35355338, %v3043_v12  ;;  %v5086_v14 = vpop.f32.mrb[33].mxu1 }
 0xbcc   :  { %v3076_v15 = vsel %vm150_vm2, %v3054_v13, -inf }
 0xbcd   :  { %3077 = vmax.xlane.f32.xlu0 %v3076_v15 }
 0xbd9   :  { %3659 = vrot.lane.b32.xlu1 %v5733_v37, %s5381_s6 }
 0xbe2   :  { %v3057_v16 = vpop.xlane.xlu0 %3056 }
 0xbe3   :  { %v3079_v17 = vsub.f32 %v3047_v48, %v3057_v16  ;;  %3583 = vrot.lane.b32.xlu0 %v5723_v33, %s5381_s6 }
 0xbe5   :  { %v3087_v18 = vmul.f32 1.442695, %v3079_v17 }
 0xbe7   :  { %5311 = vpow2.f32 %v3087_v18 }
 0xbf1   :  { %v5312_v20 = vpop.eup %5311 }
 0xbf2   :  { %5090 = vmatmul.mubr.msk.f32.vlgmr.msra.gmra.mrb[38].mxu0 %vm150_vm2, %v5312_v20  ;;  %v3103_v22 = vsel %vm150_vm2, %v5312_v20, 0.0 }
 0xbf3   :  { %5098 = vmatpush3.msra.mxu0 %v3280_v21  ;;  %5099 = vmatprep.mubr.msk.f32.mxu0 %vm5378_vm1, %v5375_v10  ;;  %v4679_v21 = vld [vmem:[%s5971_s3 + $0x70] sm:$0xff] }
 0xbf4   :  { %5107 = vmatprep.subr.mxu0 %v5375_v10 }
 0xbfd   :  { %3104 = vadd.xlane.f32.xlu1 %v3103_v22 }
 0xc4d   :  { %v3063_v26 = vpop.xlane.xlu0 %3062  ;;  %v3060_v27 = vpop.xlane.xlu1 %3059 }
 0xc4e   :  { %v3081_v28 = vsub.f32 %v3049_v54, %v3063_v26  ;;  %v3080_v30 = vsub.f32 %v3048_v53, %v3060_v27 }
 0xc50   :  { %v3091_v31 = vmul.f32 1.442695, %v3081_v28  ;;  %v3089_v32 = vmul.f32 1.442695, %v3080_v30 }
 0xc51   :  { %v3066_v33 = vpop.xlane.xlu0 %3065  ;;  %v3069_v34 = vpop.xlane.xlu1 %3068 }
 0xc52   :  { %5313 = vpow2.f32 %v3091_v31  ;;  %v3082_v35 = vsub.f32 %v3050_v62, %v3066_v33  ;;  %v3083_v36 = vsub.f32 %v3051_v61, %v3069_v34 }
 0xc53   :  { %5315 = vpow2.f32 %v3089_v32 }
 0xc54   :  { %v3093_v37 = vmul.f32 1.442695, %v3082_v35  ;;  %v3095_v38 = vmul.f32 1.442695, %v3083_v36 }
 0xc55   :  { %v3075_v39 = vpop.xlane.xlu1 %3074 }
 0xc56   :  { %5317 = vpow2.f32 %v3093_v37  ;;  %v3072_v40 = vpop.xlane.xlu0 %3071  ;;  %v3085_v29 = vsub.f32 %v3053_v3, %v3075_v39 }
 0xc57   :  { %5319 = vpow2.f32 %v3095_v38  ;;  %v3084_v41 = vsub.f32 %v3052_v6, %v3072_v40 }
 0xc58   :  { %v3099_v42 = vmul.f32 1.442695, %v3085_v29 }
 0xc59   :  { %v3097_v44 = vmul.f32 1.442695, %v3084_v41  ;;  %v3660_v56 = vpop.permute.xlu1 %3659 }
 0xc5a   :  { %5321 = vpow2.f32 %v3099_v42  ;;  %v3078_v45 = vpop.xlane.xlu0 %3077 }
 0xc5b   :  { %5323 = vpow2.f32 %v3097_v44  ;;  %v3086_v46 = vsub.f32 %v3054_v13, %v3078_v45 }
 0xc5c   :  { %v5314_v47 = vpop.eup %5313 }
 0xc5d   :  { %v5316_v48 = vpop.eup %5315  ;;  %v3101_v49 = vmul.f32 1.442695, %v3086_v46  ;;  %5100 = vmatmul.mubr.msk.f32.vlgmr.msra.gmra.mrb[40].mxu0 %vm150_vm2, %v5314_v47 }
 0xc5e   :  { %5095 = vmatmul.mubr.msk.f32.vlgmr.msra.gmra.mrb[34].mxu1 %vm150_vm2, %v5316_v48  ;;  %5108 = vmatpush3.msra.mxu0 %v5771_v43  ;;  %v3106_v50 = vsel %vm150_vm2, %v5316_v48, 0.0  ;;  %v3584_v53 = vpop.permute.xlu0 %3583  ;;  %v3109_v43 = vsel %vm150_vm2, %v5314_v47, 0.0 }
 0xc5f   :  { %5325 = vpow2.f32 %v3101_v49  ;;  %5103 = vmatpush3.msra.mxu1 %v3356_v25  ;;  %3107 = vadd.xlane.f32.xlu0 %v3106_v50 }
 0xc60   :  { %v5318_v51 = vpop.eup %5317  ;;  %5104 = vmatprep.mubr.msk.f32.mxu1 %vm5378_vm1, %v5375_v10  ;;  %5109 = vmatprep.mubr.msk.f32.mxu0 %vm5378_vm1, %v5375_v10 }
 0xc61   :  { %v5320_v52 = vpop.eup %5319  ;;  %5112 = vmatprep.subr.mxu1 %v5375_v10  ;;  %5117 = vmatprep.subr.mxu0 %v5375_v10  ;;  %v3112_v58 = vsel %vm150_vm2, %v5318_v51, 0.0 }
 0xc62   :  { %5105 = vmatmul.mubr.msk.f32.vlgmr.msra.gmra.mrb[36].mxu1 %vm150_vm2, %v5318_v51  ;;  %5110 = vmatmul.mubr.msk.f32.vlgmr.msra.gmra.mrb[42].mxu0 %vm150_vm2, %v5320_v52  ;;  %v3115_v62 = vsel %vm150_vm2, %v5320_v52, 0.0 }
 0xc63   :  { %5113 = vmatpush3.msra.mxu1 %v3508_v19  ;;  %5118 = vmatpush3.msra.mxu0 %v3584_v53 }
 0xc64   :  { %v5322_v54 = vpop.eup %5321  ;;  %3110 = vadd.xlane.f32.xlu0 %v3109_v43  ;;  %5114 = vmatprep.mubr.msk.f32.mxu1 %vm5378_vm1, %v5375_v10 }
 0xc65   :  { %v5324_v55 = vpop.eup %5323  ;;  %5119 = vmatprep.mubr.msk.f32.mxu0 %vm5378_vm1, %v5375_v10  ;;  %5122 = vmatprep.subr.mxu1 %v5375_v10  ;;  %v3121_v61 = vsel %vm150_vm2, %v5322_v54, 0.0 }
 0xc66   :  { %5115 = vmatmul.mubr.msk.f32.vlgmr.msra.gmra.mrb[38].mxu1 %vm150_vm2, %v5324_v55  ;;  %5120 = vmatmul.mubr.msk.f32.vlgmr.msra.gmra.mrb[44].mxu0 %vm150_vm2, %v5322_v54  ;;  %v3118_v57 = vsel %vm150_vm2, %v5324_v55, 0.0 }
 0xc67   :  { %5123 = vmatpush3.msra.mxu1 %v3660_v56  ;;  %3119 = vadd.xlane.f32.xlu1 %v3118_v57  ;;  %v4724_v56 = vld [vmem:[%s5969_s1 + $0x49] ss:$0 sm:$0xff] }
 0xc68   :  { %3113 = vadd.xlane.f32.xlu0 %v3112_v58  ;;  %5124 = vmatprep.mubr.msk.f32.mxu1 %vm5378_vm1, %v5375_v10 }
 0xc69   :  { %v5326_v60 = vpop.eup %5325  ;;  %5132 = vmatprep.subr.mxu1 %v5375_v10  ;;  %5127 = vmatprep.subr.mxu0 %v5375_v10 }
 0xc6a   :  { %5125 = vmatmul.mubr.msk.f32.vlgmr.msra.gmra.mrb[40].mxu1 %vm150_vm2, %v5326_v60  ;;  %5129 = vmatprep.mubr.msk.f32.mxu0 %vm5378_vm1, %v5375_v10  ;;  %v3124_v5 = vsel %vm150_vm2, %v5326_v60, 0.0 }
 0xc6b   :  { %3122 = vadd.xlane.f32.xlu1 %v3121_v61  ;;  %5133 = vmatpush3.msra.mxu1 %v5830_v59 }
 0xc6c   :  { %3116 = vadd.xlane.f32.xlu0 %v3115_v62  ;;  %5134 = vmatprep.mubr.msk.f32.mxu1 %vm5378_vm1, %v5375_v10 }
 0xc6d   :  { %5142 = vmatprep.subr.mxu1 %v5375_v10  ;;  %5128 = vmatpush3.msra.mxu0 %v4678_v63 }
 0xc6e   :  { %5137 = vmatprep.subr.mxu0 %v5375_v10 }
 0xc70   :  { %3125 = vadd.xlane.f32.xlu0 %v3124_v5 }
 0xc8a   :  { %v3105_v0 = vpop.xlane.xlu1 %3104 }
 0xc8b   :  { %5327 = vrcp.f32 %v3105_v0 }
 0xc95   :  { %v5328_v1 = vpop.eup %5327 }
 0xcc5   :  { %v3199_v2 = vpop.f32.mrb[38].mxu0 }
 0xcc6   :  { %v3743_v3 = vmul.f32 %v5328_v1, %v3199_v2  ;;  %v5091_v7 = vpop.f32.mrb[39].mxu0 }
 0xcc8   :  { %5135 = vmatmul.mubr.msk.f32.vlgmr.msra.gmra.mrb[42].mxu1 %vm150_vm2, %v3743_v3 }
 0xcc9   :  { %5143 = vmatpush3.msra.mxu1 %v5851_v4  ;;  %5144 = vmatprep.mubr.msk.f32.mxu1 %vm5378_vm1, %v5375_v10 }
 0xcca   :  { %5152 = vmatprep.subr.mxu1 %v5375_v10 }
 0xcec   :  { %v3108_v6 = vpop.xlane.xlu0 %3107 }
 0xced   :  { %5329 = vrcp.f32 %v3108_v6 }
 0xcf1   :  { %v3111_v8 = vpop.xlane.xlu0 %3110 }
 0xcf2   :  { %5331 = vrcp.f32 %v3111_v8 }
 0xcf4   :  { %v3120_v11 = vpop.xlane.xlu1 %3119 }
 0xcf5   :  { %v3114_v9 = vpop.xlane.xlu0 %3113 }
 0xcf6   :  { %5333 = vrcp.f32 %v3114_v9 }
 0xcf7   :  { %5335 = vrcp.f32 %v3120_v11  ;;  %v5330_v16 = vpop.eup %5329 }
 0xcf8   :  { %v3123_v13 = vpop.xlane.xlu1 %3122 }
 0xcf9   :  { %v3117_v12 = vpop.xlane.xlu0 %3116 }
 0xcfa   :  { %5337 = vrcp.f32 %v3117_v12 }
 0xcfb   :  { %5339 = vrcp.f32 %v3123_v13 }
 0xcfc   :  { %v5332_v22 = vpop.eup %5331 }
 0xcfd   :  { %v3126_v14 = vpop.xlane.xlu0 %3125 }
 0xcfe   :  { %5341 = vrcp.f32 %v3126_v14 }
 0xd00   :  { %v5334_v25 = vpop.eup %5333 }
 0xd01   :  { %v5336_v33 = vpop.eup %5335 }
 0xd04   :  { %v5338_v34 = vpop.eup %5337 }
 0xd05   :  { %v5340_v29 = vpop.eup %5339 }
 0xd08   :  { %v5342_v41 = vpop.eup %5341 }
 0xd30   :  { %v3351_v15 = vpop.f32.mrb[40].mxu0 }
 0xd31   :  { %v3275_v17 = vpop.f32.mrb[34].mxu1  ;;  %v5101_v18 = vpop.f32.mrb[41].mxu0  ;;  %v3745_v28 = vmul.f32 %v5332_v22, %v3351_v15  ;;  %v4675_v22 = vld [vmem:[%s5970_s2 + $0x30] sm:$0xff] }
 0xd32   :  { %v3744_v19 = vmul.f32 %v5330_v16, %v3275_v17  ;;  %v5096_v20 = vpop.f32.mrb[35].mxu1 }
 0xd33   :  { %v4674_v20 = vld [vmem:[%s5970_s2 + $0x28] sm:$0xff] }
 0xd34   :  { %5130 = vmatmul.mubr.msk.f32.vlgmr.msra.gmra.mrb[46].mxu0 %vm150_vm2, %v3744_v19 }
 0xd35   :  { %v3427_v26 = vpop.f32.mrb[36].mxu1  ;;  %v3503_v27 = vpop.f32.mrb[42].mxu0  ;;  %5138 = vmatpush3.msra.mxu0 %v4679_v21  ;;  %5139 = vmatprep.mubr.msk.f32.mxu0 %vm5378_vm1, %v5375_v10 }
 0xd36   :  { %v3746_v30 = vmul.f32 %v5334_v25, %v3427_v26  ;;  %v5106_v31 = vpop.f32.mrb[37].mxu1  ;;  %v5111_v32 = vpop.f32.mrb[43].mxu0  ;;  %5147 = vmatprep.subr.mxu0 %v5375_v10  ;;  %v3747_v37 = vmul.f32 %v5338_v34, %v3503_v27  ;;  %v4676_v25 = vld [vmem:[%s5970_s2 + $0x38] sm:$0xff]  ;;  %v4681_v27 = vld [vmem:[%s5971_s3 + $0x80] sm:$0xff] }
 0xd37   :  { %v5241_v26 = vpack.c.bf16 %v4676_v25, %v4675_v22  ;;  %v4684_v32 = vld [vmem:[%s5971_s3 + $0x98] sm:$0xff]  ;;  %v4685_v34 = vld [vmem:[%s5971_s3 + $0xa0] sm:$0xff]  ;;  %v4733_v22 = vld [vmem:[%s5969_s1 + $0x4e] ss:$0 sm:$0xff] }
 0xd38   :  { %5140 = vmatmul.mubr.msk.f32.vlgmr.msra.gmra.mrb[48].mxu0 %vm150_vm2, %v3745_v28  ;;  %5145 = vmatmul.mubr.msk.f32.vlgmr.msra.gmra.mrb[44].mxu1 %vm150_vm2, %v3746_v30  ;;  %v4682_v28 = vld [vmem:[%s5971_s3 + $0x88] sm:$0xff]  ;;  %v4683_v30 = vld [vmem:[%s5971_s3 + $0x90] sm:$0xff] }
 0xd39   :  { %v3579_v35 = vpop.f32.mrb[38].mxu1  ;;  %v3655_v36 = vpop.f32.mrb[44].mxu0  ;;  %5148 = vmatpush3.msra.mxu0 %v4678_v63  ;;  %5149 = vmatprep.mubr.msk.f32.mxu0 %vm5378_vm1, %v5375_v10  ;;  %v5245_v31 = vpack.c.bf16 %v4682_v28, %v4681_v27  ;;  %v4734_v28 = vld [vmem:[%s5969_s1 + $0x4f] ss:$0 sm:$0xff] }
 0xd3a   :  { %v3748_v38 = vmul.f32 %v5336_v33, %v3579_v35  ;;  %v5116_v39 = vpop.f32.mrb[39].mxu1  ;;  %v5121_v40 = vpop.f32.mrb[45].mxu0  ;;  %5153 = vmatpush3.msra.mxu1 %v5830_v59  ;;  %5154 = vmatprep.mubr.msk.f32.mxu1 %vm5378_vm1, %v5375_v10  ;;  %v3749_v44 = vmul.f32 %v5340_v29, %v3655_v36  ;;  %v5249_v33 = vpack.c.bf16 %v4684_v32, %v4683_v30  ;;  %v4686_v35 = vld [vmem:[%s5971_s3 + $0xa8] sm:$0xff] }
 0xd3b   :  { %5157 = vmatprep.subr.mxu0 %v5375_v10  ;;  %5162 = vmatprep.subr.mxu1 %v5375_v10  ;;  %v5253_v36 = vpack.c.bf16 %v4686_v35, %v4685_v34 }
 0xd3c   :  { %5150 = vmatmul.mubr.msk.f32.vlgmr.msra.gmra.mrb[50].mxu0 %vm150_vm2, %v3748_v38  ;;  %5155 = vmatmul.mubr.msk.f32.vlgmr.msra.gmra.mrb[46].mxu1 %vm150_vm2, %v3747_v37 }
 0xd3d   :  { %v3731_v42 = vpop.f32.mrb[40].mxu1  ;;  %5158 = vmatpush3.msra.mxu0 %v4679_v21  ;;  %5159 = vmatprep.mubr.msk.f32.mxu0 %vm5378_vm1, %v5375_v10 }
 0xd3e   :  { %v3750_v45 = vmul.f32 %v5342_v41, %v3731_v42  ;;  %v5126_v46 = vpop.f32.mrb[41].mxu1  ;;  %5163 = vmatpush3.msra.mxu1 %v5851_v4  ;;  %5164 = vmatprep.mubr.msk.f32.mxu1 %vm5378_vm1, %v5375_v10 }
 0xd3f   :  { %5246 = vmatprep.subr.bf16.mxu1 %v5245_v31  ;;  %v4726_v46 = vld [vmem:[%s5969_s1 + $0x4d] ss:$0 sm:$0xff] }
 0xd40   :  { %5160 = vmatmul.mubr.msk.f32.vlgmr.msra.gmra.mrb[52].mxu0 %vm150_vm2, %v3749_v44  ;;  %5165 = vmatmul.mubr.msk.f32.vlgmr.msra.gmra.mrb[48].mxu1 %vm150_vm2, %v3750_v45  ;;  %v4725_v44 = vld [vmem:[%s5969_s1 + $0x4c] ss:$0 sm:$0xff] }
 0xd41   :  { %5248 = vmatpush3.bf16.msra.mxu1 %v5245_v31 }
 0xd42   :  { %5250 = vmatprep.subr.bf16.mxu1 %v5249_v33 }
 0xd45   :  { %5252 = vmatpush3.bf16.msra.mxu1 %v5249_v33 }
 0xd46   :  { %5254 = vmatprep.subr.bf16.mxu1 %v5253_v36 }
 0xd49   :  { %5256 = vmatpush3.bf16.msra.mxu1 %v5253_v36 }
 0xd9b   :  { %v3893_v47 = vpop.f32.mrb[42].mxu1 }
 0xd9c   :  { %v5136_v48 = vpop.f32.mrb[43].mxu1 }
 0xe07   :  { %v3820_v49 = vpop.f32.mrb[46].mxu0 }
 0xe08   :  { %v3894_v50 = vadd.f32 %v3893_v47, %v3820_v49  ;;  %v5131_v51 = vpop.f32.mrb[47].mxu0 }
 0xe0b   :  { %v3966_v52 = vpop.f32.mrb[48].mxu0  ;;  %v4040_v53 = vpop.f32.mrb[44].mxu1 }
 0xe0c   :  { %v3970_v43 = vadd.f32 %v3966_v52, %v3894_v50  ;;  %v5141_v54 = vpop.f32.mrb[49].mxu0  ;;  %v5146_v55 = vpop.f32.mrb[45].mxu1 }
 0xe0d   :  { %v4727_v55 = vld [vmem:[%s5969_s1 + $0x4a] ss:$0 sm:$0xff] }
 0xe0e   :  { %v4044_v57 = vadd.f32 %v4040_v53, %v3970_v43  ;;  %v4687_v53 = vld [vmem:[%s5971_s3 + $0xb0] sm:$0xff]  ;;  %v4688_v43 = vld [vmem:[%s5971_s3 + $0xb8] sm:$0xff] }
 0xe0f   :  { %v4114_v10 = vpop.f32.mrb[50].mxu0  ;;  %v4187_v58 = vpop.f32.mrb[46].mxu1  ;;  %v5257_v54 = vpack.c.bf16 %v4688_v43, %v4687_v53 }
 0xe10   :  { %v4343_v59 = vadd.f32 %v4724_v56, %v4044_v57  ;;  %v4188_v60 = vadd.f32 %v4187_v58, %v4114_v10  ;;  %v5151_v61 = vpop.f32.mrb[51].mxu0  ;;  %v5156_v62 = vpop.f32.mrb[47].mxu1 }
 0xe11   :  { %5258 = vmatprep.subr.bf16.mxu1 %v5257_v54  ;;  %v4730_v61 = vld [vmem:[%s5969_s1 + $0x4b] ss:$0 sm:$0xff] }
 0xe12   :  { %v4345_v5 = vadd.f32 %v4343_v59, %v5701_v23  ;;  %5260 = vmatpush3.bf16.msra.mxu1 %v5257_v54 }
 0xe13   :  { %v4260_v63 = vpop.f32.mrb[52].mxu0  ;;  %v4334_v0 = vpop.f32.mrb[48].mxu1 }
 0xe14   :  { %v4264_v1 = vadd.f32 %v4260_v63, %v4188_v60  ;;  %v5161_v2 = vpop.f32.mrb[53].mxu0  ;;  %v5166_v3 = vpop.f32.mrb[49].mxu1  ;;  %v4347_v7 = vsel %vm52_vm0, %v4345_v5, 0.0 }
 0xe15   :  { %4348 = vadd.xlane.f32.xlu1 %v4347_v7 }
 0xe16   :  { %v4338_v4 = vadd.f32 %v4334_v0, %v4264_v1 }
 0xe18   :  { %v4344_v6 = vadd.f32 %v4724_v56, %v4338_v4 }
 0xe1a   :  { %v4346_v8 = vadd.f32 %v4344_v6, %v5703_v24  ;;  %v4673_v24 = vld [vmem:[%s5970_s2 + $0x20] sm:$0xff] }
 0xe1b   :  { %v5237_v21 = vpack.c.bf16 %v4674_v20, %v4673_v24 }
 0xe1c   :  { %v4350_v9 = vsel %vm52_vm0, %v4346_v8, 0.0 }
 0xe1d   :  { %4351 = vadd.xlane.f32.xlu0 %v4350_v9  ;;  %5238 = vmatprep.subr.bf16.mxu0 %v5237_v21 }
 0xe1e   :  { %5240 = vmatpush3.bf16.msra.mxu0 %v5237_v21 }
 0xe1f   :  { %5242 = vmatprep.subr.bf16.mxu0 %v5241_v26 }
 0xe22   :  { %5244 = vmatpush3.bf16.msra.mxu0 %v5241_v26 }
 0xea2   :  { %v4349_v11 = vpop.xlane.xlu1 %4348 }
 0xea3   :  { %v4353_v12 = vmul.f32 0.03125, %v4349_v11 }
 0xea5   :  { %v4355_v13 = vsub.f32 %v4345_v5, %v4353_v12 }
 0xea7   :  { %v4357_v14 = vmul.f32 %v4355_v13, %v4355_v13 }
 0xea9   :  { %v4359_v23 = vsel %vm52_vm0, %v4357_v14, 0.0 }
 0xeaa   :  { %v4352_v15 = vpop.xlane.xlu0 %4351  ;;  %4360 = vadd.xlane.f32.xlu1 %v4359_v23 }
 0xeab   :  { %v4354_v16 = vmul.f32 0.03125, %v4352_v15 }
 0xead   :  { %v4356_v17 = vsub.f32 %v4346_v8, %v4354_v16 }
 0xeaf   :  { %v4358_v18 = vmul.f32 %v4356_v17, %v4356_v17 }
 0xeb1   :  { %v4362_v19 = vsel %vm52_vm0, %v4358_v18, 0.0 }
 0xeb2   :  { %4363 = vadd.xlane.f32.xlu0 %v4362_v19 }
 0xf37   :  { %v4361_v37 = vpop.xlane.xlu1 %4360 }
 0xf38   :  { %v4365_v38 = vmul.f32 0.03125, %v4361_v37 }
 0xf3a   :  { %v4367_v39 = vadd.f32 1e-05, %v4365_v38 }
 0xf3c   :  { %5343 = vrsqrt.f32 %v4367_v39 }
 0xf3f   :  { %v4364_v40 = vpop.xlane.xlu0 %4363 }
 0xf40   :  { %v4366_v29 = vmul.f32 0.03125, %v4364_v40 }
 0xf42   :  { %v4368_v41 = vadd.f32 1e-05, %v4366_v29 }
 0xf44   :  { %5345 = vrsqrt.f32 %v4368_v41 }
 0xf46   :  { %v5344_v42 = vpop.eup %5343 }
 0xf47   :  { %v4371_v45 = vmul.f32 %v5344_v42, %v4355_v13 }
 0xf49   :  { %v4377_v47 = vmul.f32 %v4725_v44, %v4371_v45 }
 0xf4b   :  { %v4383_v48 = vadd.f32 %v4726_v46, %v4377_v47 }
 0xf4d   :  { %5175 = vmatprep.mubr.msk.f32.mxu0 %vm52_vm0, %v4383_v48 }
 0xf4e   :  { %v5346_v49 = vpop.eup %5345 }
 0xf4f   :  { %v4372_v50 = vmul.f32 %v5346_v49, %v4356_v17 }
 0xf51   :  { %v4378_v51 = vmul.f32 %v4725_v44, %v4372_v50 }
 0xf53   :  { %v4384_v52 = vadd.f32 %v4726_v46, %v4378_v51 }
 0xf55   :  { %5176 = vmatmul.mubr.msk.f32.vlgmr.msra.gmra.mrb[54].mxu0 %vm52_vm0, %v4384_v52 }
0x1028   :  { %v5177_v56 = vpop.f32.mrb[54].mxu0 }
0x1029   :  { %v4467_v57 = vadd.f32 %v5177_v56, %v4727_v55  ;;  %v4461_v10 = vpop.f32.mrb[55].mxu0 }
0x102a   :  { %v4462_v58 = vadd.f32 %v4727_v55, %v4461_v10 }
0x102b   :  { %v4471_v60 = vmax.f32 %v4467_v57, 0.0 }
0x102c   :  { %v4470_v59 = vmax.f32 %v4462_v58, 0.0 }
0x102e   :  { %5194 = vmatprep.mubr.msk.f32.mxu1 %vm2187_vm3, %v4470_v59 }
0x102f   :  { %5195 = vmatmul.mubr.msk.f32.vlgmr.msra.gmra.mrb[50].mxu1 %vm2187_vm3, %v4471_v60 }
0x1102   :  { %v5196_v62 = vpop.f32.mrb[50].mxu1 }
0x1103   :  { %v4554_v5 = vadd.f32 %v5196_v62, %v4730_v61  ;;  %v4548_v63 = vpop.f32.mrb[51].mxu1 }
0x1104   :  { %v4549_v0 = vadd.f32 %v4730_v61, %v4548_v63 }
0x1105   :  { %v4558_v1 = vadd.f32 %v4554_v5, %v4384_v52 }
0x1106   :  { %v4557_v2 = vadd.f32 %v4549_v0, %v4383_v48 }
0x1107   :  { %v4562_v3 = vsel %vm52_vm0, %v4558_v1, 0.0 }
0x1108   :  { %4563 = vadd.xlane.f32.xlu0 %v4562_v3  ;;  %v4559_v7 = vsel %vm52_vm0, %v4557_v2, 0.0 }
0x1109   :  { %4560 = vadd.xlane.f32.xlu1 %v4559_v7 }
0x1195   :  { %v4564_v4 = vpop.xlane.xlu0 %4563 }
0x1196   :  { %v4566_v6 = vmul.f32 0.03125, %v4564_v4  ;;  %v4561_v8 = vpop.xlane.xlu1 %4560 }
0x1197   :  { %v4565_v9 = vmul.f32 0.03125, %v4561_v8 }
0x1198   :  { %v4568_v11 = vsub.f32 %v4558_v1, %v4566_v6 }
0x1199   :  { %v4567_v12 = vsub.f32 %v4557_v2, %v4565_v9 }
0x119a   :  { %v4570_v13 = vmul.f32 %v4568_v11, %v4568_v11 }
0x119b   :  { %v4569_v14 = vmul.f32 %v4567_v12, %v4567_v12 }
0x119c   :  { %v4574_v23 = vsel %vm52_vm0, %v4570_v13, 0.0 }
0x119d   :  { %4575 = vadd.xlane.f32.xlu0 %v4574_v23  ;;  %v4571_v15 = vsel %vm52_vm0, %v4569_v14, 0.0 }
0x119e   :  { %4572 = vadd.xlane.f32.xlu1 %v4571_v15 }
0x122a   :  { %v4576_v16 = vpop.xlane.xlu0 %4575 }
0x122b   :  { %v4578_v17 = vmul.f32 0.03125, %v4576_v16  ;;  %v4573_v18 = vpop.xlane.xlu1 %4572 }
0x122c   :  { %v4577_v19 = vmul.f32 0.03125, %v4573_v18 }
0x122d   :  { %v4580_v24 = vadd.f32 1e-05, %v4578_v17 }
0x122e   :  { %v4579_v20 = vadd.f32 1e-05, %v4577_v19 }
0x122f   :  { %5347 = vrsqrt.f32 %v4580_v24 }
0x1230   :  { %5349 = vrsqrt.f32 %v4579_v20 }
0x1239   :  { %v5348_v21 = vpop.eup %5347 }
0x123a   :  { %v5350_v25 = vpop.eup %5349  ;;  %v4584_v26 = vmul.f32 %v5348_v21, %v4568_v11 }
0x123b   :  { %v4583_v27 = vmul.f32 %v5350_v25, %v4567_v12 }
0x123c   :  { %v4590_v30 = vmul.f32 %v4733_v22, %v4584_v26 }
0x123d   :  { %v4589_v31 = vmul.f32 %v4733_v22, %v4583_v27 }
0x123e   :  { %v4596_v32 = vadd.f32 %v4734_v28, %v4590_v30 }
0x123f   :  { %v4595_v33 = vadd.f32 %v4734_v28, %v4589_v31 }
0x1240   :  { %4598 = vst.msk [vmem:[#allocation2 + $0x8] sm:$0xff] %vm52_vm0, %v4596_v32 }
0x1241   :  { %4597 = vst.msk [vmem:[#allocation2] sm:$0xff] %vm52_vm0, %v4595_v33 }
0x1242   :  { %5362 = shalt.err (!%p5359_p4)
}
0x1243   :  { %s5363_s13 = scalar_lea.hbm %s5972_s4, 256 }
0x1244   :  { %p5364_p5 = scmp.ne.s32.totalorder %s5972_s4, %s5363_s13  ;;  %p5367_p6 = scmp.lt.u32.totalorder %s5363_s13, %s5972_s4 }
0x1246   :  { %p5369_p7 = pnand %p5367_p6, %p5364_p5 }
0x1248   :  { %5372 = shalt.err (!%p5369_p7)
}
0x1249   :  { %s5383_s2 = smov 128   ;;  %s5384_s18 = smov 8  }
0x124a   :  { %4610 = dma.vmem_to_hbm [thread:$0]  %s4605_s10, 256, %s5972_s4, [#allocation3], %s5383_s2, %s5383_s2, %s5384_s18  }
0x124b   :  { %5373 = dma.done.wait [#allocation3], 256  }
0x124c   :  { %5374 = vsyncadd [#allocation3], 4294967040 }
0x124d   :  { %4614 = vsyncpa [#allocation3], 1 }

</bundles_post_ra>
